<compile_context>
chip_gen: v6e
topology: v6e:2x2x1
jax: 0.10.0
libtpu: 0.0.40
codegen_flags: <defaults>
</compile_context>

<pallas_src>
import functools
import math

import jax
import jax.numpy as jnp
from jax import lax
from jax.experimental import pallas as pl
from jax.experimental.pallas import tpu as pltpu

_NEG_INF = -1e30


def _flash_attn_kernel(gamma_ref, q_ref, xres_ref, k_ref, v_ref, o_ref,
                       m_s, l_s, acc_s, *, n_valid, tile_kv, first_masked_tile):
    ki = pl.program_id(2)
    nk = pl.num_programs(2)

    # ---- once per (batch, q-tile): reset online-softmax state ----
    @pl.when(ki == 0)
    def _init():
        m_s[...] = jnp.full(m_s.shape, _NEG_INF, jnp.float32)
        l_s[...] = jnp.zeros(l_s.shape, jnp.float32)
        acc_s[...] = jnp.zeros(acc_s.shape, jnp.float32)

    q = q_ref[...]                                    # (tq, C8) bf16, streamed
    k = k_ref[...]                                    # (tk, C8) bf16, streamed
    v = v_ref[...]                                    # (tk, C)  bf16, streamed

    # s[n, m] = q[n, :] . k[m, :]  (same RHS-dim-1 contraction the reference
    # Pallas flash-attention kernel uses; no N-scale transpose in the kernel).
    s = lax.dot_general(q, k, (((1,), (1,)), ((), ())),
                        preferred_element_type=jnp.float32)       # (tq, tk) f32

    # Mask padded kv columns, but only on tiles that can contain padding.
    if first_masked_tile is not None:  # static: padding exists at all
        def _mask(s_in):
            col = ki * tile_kv + lax.broadcasted_iota(jnp.int32, s_in.shape, 1)
            return jnp.where(col < n_valid, s_in, _NEG_INF)
        s = lax.cond(ki >= first_masked_tile, _mask, lambda s_in: s_in, s)

    # ---- online softmax update (f32 stats) ----
    m_prev = m_s[...]
    m_new = jnp.maximum(m_prev, jnp.max(s, axis=-1, keepdims=True))
    alpha = jnp.exp(m_prev - m_new)
    p = jnp.exp(s - m_new)
    l_s[...] = alpha * l_s[...] + jnp.sum(p, axis=-1, keepdims=True)
    acc_s[...] = alpha * acc_s[...] + jnp.dot(
        p.astype(jnp.bfloat16), v, preferred_element_type=jnp.float32)
    m_s[...] = m_new

    # ---- finalize: single approximate reciprocal (EUP), f32 residual ----
    @pl.when(ki == nk - 1)
    def _finalize():
        inv_l = pl.reciprocal(l_s[...], approx=True)
        out = gamma_ref[0] * (acc_s[...] * inv_l) + xres_ref[...]
        o_ref[...] = out.astype(o_ref.dtype)


def self_attention_block(x, params, *, tile_q=512, tile_kv=512):
    """x: (B, C, N). params: wq/bq/wk/bk/wv/bv (PyTorch Conv1d shapes) + gamma."""
    B, C, N = x.shape
    assert C % 8 == 0, "in_channels must be a multiple of 8 (C // 8 projection)"
    C8 = C // 8

    def round_up(a, m):
        return (a + m - 1) // m * m

    # bf16 sublane packing wants multiples of 16; defaults are MXU-friendly (512).
    tq = max(16, round_up(min(tile_q, round_up(N, 16)), 16))
    tk = max(16, round_up(min(tile_kv, round_up(N, 16)), 16))
    n_pad = round_up(N, math.lcm(tq, tk))
    nq, nk = n_pad // tq, n_pad // tk

    # ---- one-time projection prologue (XLA), hoisted out of the kv loop ----
    x_t = jnp.transpose(x, (0, 2, 1)).astype(jnp.float32)           # (B, N, C)
    if n_pad != N:
        x_t = jnp.pad(x_t, ((0, 0), (0, n_pad - N), (0, 0)))
    q = (jnp.einsum("bnc,oc->bno", x_t, params["wq"])
         + params["bq"][:, 0]).astype(jnp.bfloat16)                 # (B, n_pad, C8)
    k = (jnp.einsum("bnc,oc->bno", x_t, params["wk"])
         + params["bk"][:, 0]).astype(jnp.bfloat16)                 # (B, n_pad, C8)
    v = (jnp.einsum("bnc,oc->bno", x_t, params["wv"])
         + params["bv"][:, 0]).astype(jnp.bfloat16)                 # (B, n_pad, C)
    gamma = params["gamma"].astype(jnp.float32)

    # Only kv tiles with index >= first_masked_tile can contain padded columns.
    first_masked_tile = (N // tk) if n_pad != N else None

    kernel = functools.partial(_flash_attn_kernel, n_valid=N, tile_kv=tk,
                               first_masked_tile=first_masked_tile)

    out_t = pl.pallas_call(
        kernel,
        grid=(B, nq, nk),
        in_specs=[
            pl.BlockSpec(memory_space=pltpu.MemorySpace.SMEM),            # gamma (1,)
            pl.BlockSpec((None, tq, C8), lambda b, qi, ki: (b, qi, 0)),   # Q tile (bf16)
            pl.BlockSpec((None, tq, C), lambda b, qi, ki: (b, qi, 0)),    # residual x tile (f32)
            pl.BlockSpec((None, tk, C8), lambda b, qi, ki: (b, ki, 0)),   # K tile (bf16, streamed)
            pl.BlockSpec((None, tk, C), lambda b, qi, ki: (b, ki, 0)),    # V tile (bf16, streamed)
        ],
        out_specs=pl.BlockSpec((None, tq, C), lambda b, qi, ki: (b, qi, 0)),
        out_shape=jax.ShapeDtypeStruct((B, n_pad, C), x.dtype),
        scratch_shapes=[
            pltpu.VMEM((tq, 1), jnp.float32),   # running max
            pltpu.VMEM((tq, 1), jnp.float32),   # running sum
            pltpu.VMEM((tq, C), jnp.float32),   # output accumulator
        ],
        compiler_params=pltpu.CompilerParams(
            dimension_semantics=("parallel", "parallel", "arbitrary"),
            # Explicit limit: v5e's scoped default is only 16 MiB; 64 MiB also
            # fits the v7x per-TC physical VMEM.
            vmem_limit_bytes=64 * 1024 * 1024),
    )(gamma, q, x_t, k, v)

    out = jnp.transpose(out_t, (0, 2, 1))
    if n_pad != N:
        out = out[:, :, :N]
    return out


def self_attention_block_ref(x, params):
    """Pure-JAX f32 reference mirroring the PyTorch forward exactly."""
    wq, bq = params["wq"], params["bq"][:, 0]
    wk, bk = params["wk"], params["bk"][:, 0]
    wv, bv = params["wv"], params["bv"][:, 0]
    gamma = params["gamma"][0]

    q = jnp.einsum("oc,bcn->bon", wq, x) + bq[None, :, None]   # (B, C8, N)
    k = jnp.einsum("oc,bcn->bon", wk, x) + bk[None, :, None]   # (B, C8, N)
    v = jnp.einsum("oc,bcn->bon", wv, x) + bv[None, :, None]   # (B, C,  N)

    attn = jnp.einsum("bcn,bcm->bnm", q, k)                    # query^T @ key
    attn = jax.nn.softmax(attn, axis=-1)
    out = jnp.einsum("bcm,bnm->bcn", v, attn)                  # value @ attn^T
    return gamma * out + x


def make_params(key, C):
    """Deterministic synthetic parameters matching the module's shapes."""
    C8 = C // 8
    ks = jax.random.split(key, 6)
    scale = 1.0 / jnp.sqrt(C)
    return {
        "wq": jax.random.uniform(ks[0], (C8, C), jnp.float32, -scale, scale),
        "bq": jax.random.uniform(ks[1], (C8, 1), jnp.float32, -scale, scale),
        "wk": jax.random.uniform(ks[2], (C8, C), jnp.float32, -scale, scale),
        "bk": jax.random.uniform(ks[3], (C8, 1), jnp.float32, -scale, scale),
        "wv": jax.random.uniform(ks[4], (C, C), jnp.float32, -scale, scale),
        "bv": jax.random.uniform(ks[5], (C, 1), jnp.float32, -scale, scale),
        # PyTorch init is gamma=0 (identity residual); use a nonzero value so
        # the attention path is actually exercised numerically.
        "gamma": jnp.array([0.5], dtype=jnp.float32),
    }


if __name__ == "__main__":
    B, C, N = 2, 32, 200         # in_channels=32 -> C//8 = 4; N=200 exercises kv masking
    key = jax.random.PRNGKey(0)
    kx, kp = jax.random.split(key)
    x = jax.random.normal(kx, (B, C, N), dtype=jnp.float32)
    params = make_params(kp, C)

    ref = jax.block_until_ready(self_attention_block_ref(x, params))

    attn = jax.jit(self_attention_block, static_argnames=("tile_q", "tile_kv"))

    # Default tiles (clamped to padded N -> single q/kv tile, masked padded cols).
    out1 = jax.block_until_ready(attn(x, params))
    # Decoupled small tiles: 4 q-tiles x 8 kv-tiles, online softmax, a kv tile that
    # is fully padded, and the conditional (last-tiles-only) mask path.
    out2 = jax.block_until_ready(attn(x, params, tile_q=64, tile_kv=32))

    assert out1.shape == (B, C, N) and out2.shape == (B, C, N)
    # bf16 MXU operands (f32 accumulation) -> loosened tolerance vs the f32 reference.
    assert jnp.allclose(out1, ref, atol=5e-2, rtol=5e-2), "single-tile mismatch"
    assert jnp.allclose(out2, ref, atol=5e-2, rtol=5e-2), "multi-tile mismatch"
    print("KERNEL_OK")
</pallas_src>

<mosaic_0001>
module attributes {stable_mosaic.version = 11 : i64} {
  func.func @_flash_attn_kernel(%arg0: i32, %arg1: i32, %arg2: i32, %arg3: memref<1xf32, #tpu.memory_space<smem>>, %arg4: memref<1x208x4xbf16, #tpu.memory_space<vmem>>, %arg5: memref<1x208x32xf32, #tpu.memory_space<vmem>>, %arg6: memref<1x208x4xbf16, #tpu.memory_space<vmem>>, %arg7: memref<1x208x32xbf16, #tpu.memory_space<vmem>>, %arg8: memref<1x208x32xf32, #tpu.memory_space<vmem>>, %arg9: memref<208x1xf32, #tpu.memory_space<vmem>>, %arg10: memref<208x1xf32, #tpu.memory_space<vmem>>, %arg11: memref<208x32xf32, #tpu.memory_space<vmem>>) attributes {dimension_semantics = [#tpu.dimension_semantics<parallel>, #tpu.dimension_semantics<parallel>, #tpu.dimension_semantics<arbitrary>], iteration_bounds = array<i64: 2, 1, 1>, scalar_prefetch = 0 : i64, scratch_operands = 3 : i64, tpu.core_type = #tpu.core_type<tc>, window_params = [{transform_indices = @transform_0, window_bounds = array<i64: 1>}, {transform_indices = @transform_1, window_bounds = array<i64: 1, 208, 4>}, {transform_indices = @transform_2, window_bounds = array<i64: 1, 208, 32>}, {transform_indices = @transform_3, window_bounds = array<i64: 1, 208, 4>}, {transform_indices = @transform_4, window_bounds = array<i64: 1, 208, 32>}, {transform_indices = @transform_5, window_bounds = array<i64: 1, 208, 32>}]} {
    %c0_i32 = arith.constant 0 : i32
    %0 = arith.cmpi eq, %arg2, %c0_i32 : i32
    %1 = arith.extui %0 : i1 to i32
    %c0_i32_0 = arith.constant 0 : i32
    %2 = arith.cmpi ne, %1, %c0_i32_0 : i32
    scf.if %2 {
      %cst_28 = arith.constant -1.000000e+30 : f32
      %40 = vector.broadcast %cst_28 : f32 to vector<208x1xf32>
      %c0_29 = arith.constant 0 : index
      %c0_30 = arith.constant 0 : index
      %41 = vector.load %arg9[%c0_29, %c0_30] : memref<208x1xf32, #tpu.memory_space<vmem>>, vector<208x1xf32>
      tpu.vector_store %arg9[%c0_29, %c0_30], %40 {strides = array<i32>} : memref<208x1xf32, #tpu.memory_space<vmem>>, vector<208x1xf32>,
      %cst_31 = arith.constant 0.000000e+00 : f32
      %42 = vector.broadcast %cst_31 : f32 to vector<208x1xf32>
      %c0_32 = arith.constant 0 : index
      %c0_33 = arith.constant 0 : index
      %43 = vector.load %arg10[%c0_32, %c0_33] : memref<208x1xf32, #tpu.memory_space<vmem>>, vector<208x1xf32>
      tpu.vector_store %arg10[%c0_32, %c0_33], %42 {strides = array<i32>} : memref<208x1xf32, #tpu.memory_space<vmem>>, vector<208x1xf32>,
      %cst_34 = arith.constant 0.000000e+00 : f32
      %44 = vector.broadcast %cst_34 : f32 to vector<208x32xf32>
      %c0_35 = arith.constant 0 : index
      %c0_36 = arith.constant 0 : index
      %45 = vector.load %arg11[%c0_35, %c0_36] : memref<208x32xf32, #tpu.memory_space<vmem>>, vector<208x32xf32>
      tpu.vector_store %arg11[%c0_35, %c0_36], %44 {strides = array<i32>} : memref<208x32xf32, #tpu.memory_space<vmem>>, vector<208x32xf32>,
    } else {
    }
    %c0 = arith.constant 0 : index
    %c0_1 = arith.constant 0 : index
    %c0_2 = arith.constant 0 : index
    %3 = vector.load %arg4[%c0, %c0_1, %c0_2] : memref<1x208x4xbf16, #tpu.memory_space<vmem>>, vector<1x208x4xbf16>
    %4 = vector.shape_cast %3 : vector<1x208x4xbf16> to vector<208x4xbf16>
    %c0_3 = arith.constant 0 : index
    %c0_4 = arith.constant 0 : index
    %c0_5 = arith.constant 0 : index
    %5 = vector.load %arg6[%c0_3, %c0_4, %c0_5] : memref<1x208x4xbf16, #tpu.memory_space<vmem>>, vector<1x208x4xbf16>
    %6 = vector.shape_cast %5 : vector<1x208x4xbf16> to vector<208x4xbf16>
    %c0_6 = arith.constant 0 : index
    %c0_7 = arith.constant 0 : index
    %c0_8 = arith.constant 0 : index
    %7 = vector.load %arg7[%c0_6, %c0_7, %c0_8] : memref<1x208x32xbf16, #tpu.memory_space<vmem>>, vector<1x208x32xbf16>
    %8 = vector.shape_cast %7 : vector<1x208x32xbf16> to vector<208x32xbf16>
    %cst = arith.constant dense<0.000000e+00> : vector<208x208xf32>
    %9 = tpu.matmul %4, %6, %cst {dimension_numbers = #tpu.dot_dimension_numbers<[1], [1], [0], [0], [0, 0, 1, 0], [], []>} : vector<208x4xbf16>, vector<208x4xbf16>, vector<208x208xf32> -> vector<208x208xf32>
    %c0_i32_9 = arith.constant 0 : i32
    %10 = arith.cmpi sge, %arg2, %c0_i32_9 : i32
    %11 = arith.extui %10 : i1 to i32
    %c0_i32_10 = arith.constant 0 : i32
    %12 = arith.cmpi ne, %11, %c0_i32_10 : i32
    %13 = scf.if %12 -> (vector<208x208xf32>) {
      %c208_i32 = arith.constant 208 : i32
      %40 = arith.muli %arg2, %c208_i32 : i32
      %41 = tpu.iota {dimensions = array<i32: 1>} : vector<208x208xi32>
      %42 = vector.broadcast %40 : i32 to vector<208x208xi32>
      %43 = arith.addi %42, %41 : vector<208x208xi32>
      %c200_i32 = arith.constant 200 : i32
      %44 = vector.broadcast %c200_i32 : i32 to vector<208x208xi32>
      %45 = arith.cmpi slt, %43, %44 : vector<208x208xi32>
      %cst_28 = arith.constant -1.000000e+30 : f32
      %46 = vector.broadcast %cst_28 : f32 to vector<208x208xf32>
      %47 = arith.select %45, %9, %46 : vector<208x208xi1>, vector<208x208xf32>
      scf.yield %47 : vector<208x208xf32>
    } else {
      scf.yield %9 : vector<208x208xf32>
    }
    %c0_11 = arith.constant 0 : index
    %c0_12 = arith.constant 0 : index
    %14 = vector.load %arg9[%c0_11, %c0_12] : memref<208x1xf32, #tpu.memory_space<vmem>>, vector<208x1xf32>
    %cst_13 = arith.constant dense<0xFF800000> : vector<208xf32>
    %15 = vector.multi_reduction <maximumf>, %13, %cst_13 [1] : vector<208x208xf32> to vector<208xf32>
    %16 = vector.shape_cast %15 : vector<208xf32> to vector<208x1xf32>
    %17 = arith.maximumf %14, %16 : vector<208x1xf32>
    %18 = arith.subf %14, %17 : vector<208x1xf32>
    %19 = math.exp %18 : vector<208x1xf32>
    %20 = vector.broadcast %17 : vector<208x1xf32> to vector<208x208xf32>
    %21 = arith.subf %13, %20 : vector<208x208xf32>
    %22 = math.exp %21 : vector<208x208xf32>
    %c0_14 = arith.constant 0 : index
    %c0_15 = arith.constant 0 : index
    %23 = vector.load %arg10[%c0_14, %c0_15] : memref<208x1xf32, #tpu.memory_space<vmem>>, vector<208x1xf32>
    %24 = arith.mulf %19, %23 : vector<208x1xf32>
    %cst_16 = arith.constant dense<0.000000e+00> : vector<208xf32>
    %25 = vector.multi_reduction <add>, %22, %cst_16 [1] : vector<208x208xf32> to vector<208xf32>
    %26 = vector.shape_cast %25 : vector<208xf32> to vector<208x1xf32>
    %27 = arith.addf %24, %26 : vector<208x1xf32>
    %c0_17 = arith.constant 0 : index
    %c0_18 = arith.constant 0 : index
    %28 = vector.load %arg10[%c0_17, %c0_18] : memref<208x1xf32, #tpu.memory_space<vmem>>, vector<208x1xf32>
    tpu.vector_store %arg10[%c0_17, %c0_18], %27 {strides = array<i32>} : memref<208x1xf32, #tpu.memory_space<vmem>>, vector<208x1xf32>,
    %c0_19 = arith.constant 0 : index
    %c0_20 = arith.constant 0 : index
    %29 = vector.load %arg11[%c0_19, %c0_20] : memref<208x32xf32, #tpu.memory_space<vmem>>, vector<208x32xf32>
    %30 = vector.broadcast %19 : vector<208x1xf32> to vector<208x32xf32>
    %31 = arith.mulf %30, %29 : vector<208x32xf32>
    %32 = arith.truncf %22 : vector<208x208xf32> to vector<208x208xbf16>
    %cst_21 = arith.constant dense<0.000000e+00> : vector<208x32xf32>
    %33 = tpu.matmul %32, %8, %cst_21 {dimension_numbers = #tpu.dot_dimension_numbers<[1], [0], [0], [1], [0, 0, 1, 1], [], []>} : vector<208x208xbf16>, vector<208x32xbf16>, vector<208x32xf32> -> vector<208x32xf32>
    %34 = arith.addf %31, %33 : vector<208x32xf32>
    %c0_22 = arith.constant 0 : index
    %c0_23 = arith.constant 0 : index
    %35 = vector.load %arg11[%c0_22, %c0_23] : memref<208x32xf32, #tpu.memory_space<vmem>>, vector<208x32xf32>
    tpu.vector_store %arg11[%c0_22, %c0_23], %34 {strides = array<i32>} : memref<208x32xf32, #tpu.memory_space<vmem>>, vector<208x32xf32>,
    %c0_24 = arith.constant 0 : index
    %c0_25 = arith.constant 0 : index
    %36 = vector.load %arg9[%c0_24, %c0_25] : memref<208x1xf32, #tpu.memory_space<vmem>>, vector<208x1xf32>
    tpu.vector_store %arg9[%c0_24, %c0_25], %17 {strides = array<i32>} : memref<208x1xf32, #tpu.memory_space<vmem>>, vector<208x1xf32>,
    %c0_i32_26 = arith.constant 0 : i32
    %37 = arith.cmpi eq, %arg2, %c0_i32_26 : i32
    %38 = arith.extui %37 : i1 to i32
    %c0_i32_27 = arith.constant 0 : i32
    %39 = arith.cmpi ne, %38, %c0_i32_27 : i32
    scf.if %39 {
      %c0_28 = arith.constant 0 : index
      %c0_29 = arith.constant 0 : index
      %40 = vector.load %arg10[%c0_28, %c0_29] : memref<208x1xf32, #tpu.memory_space<vmem>>, vector<208x1xf32>
      %41 = tpu.reciprocal %40 {approx = true} : vector<208x1xf32> -> vector<208x1xf32>
      %c0_30 = arith.constant 0 : index
      %42 = memref.load %arg3[%c0_30] : memref<1xf32, #tpu.memory_space<smem>>
      %c0_31 = arith.constant 0 : index
      %c0_32 = arith.constant 0 : index
      %43 = vector.load %arg11[%c0_31, %c0_32] : memref<208x32xf32, #tpu.memory_space<vmem>>, vector<208x32xf32>
      %44 = vector.broadcast %41 : vector<208x1xf32> to vector<208x32xf32>
      %45 = arith.mulf %43, %44 : vector<208x32xf32>
      %46 = vector.broadcast %42 : f32 to vector<208x32xf32>
      %47 = arith.mulf %46, %45 : vector<208x32xf32>
      %c0_33 = arith.constant 0 : index
      %c0_34 = arith.constant 0 : index
      %c0_35 = arith.constant 0 : index
      %48 = vector.load %arg5[%c0_33, %c0_34, %c0_35] : memref<1x208x32xf32, #tpu.memory_space<vmem>>, vector<1x208x32xf32>
      %49 = vector.shape_cast %48 : vector<1x208x32xf32> to vector<208x32xf32>
      %50 = arith.addf %47, %49 : vector<208x32xf32>
      %c0_36 = arith.constant 0 : index
      %c0_37 = arith.constant 0 : index
      %c0_38 = arith.constant 0 : index
      %51 = vector.load %arg8[%c0_36, %c0_37, %c0_38] : memref<1x208x32xf32, #tpu.memory_space<vmem>>, vector<1x208x32xf32>
      %52 = vector.shape_cast %51 : vector<1x208x32xf32> to vector<208x32xf32>
      %53 = vector.shape_cast %50 : vector<208x32xf32> to vector<1x208x32xf32>
      tpu.vector_store %arg8[%c0_36, %c0_37, %c0_38], %53 {strides = array<i32>} : memref<1x208x32xf32, #tpu.memory_space<vmem>>, vector<1x208x32xf32>,
    } else {
    }
    return
  }
  func.func @transform_0(%arg0: i32, %arg1: i32, %arg2: i32) -> i32 {
    %c0_i32 = arith.constant 0 : i32
    %c0_i32_0 = arith.constant 0 : i32
    return %c0_i32 : i32
  }
  func.func @transform_1(%arg0: i32, %arg1: i32, %arg2: i32) -> (i32, i32, i32) {
    %c0_i32 = arith.constant 0 : i32
    %c0_i32_0 = arith.constant 0 : i32
    return %arg0, %arg1, %c0_i32 : i32, i32, i32
  }
  func.func @transform_2(%arg0: i32, %arg1: i32, %arg2: i32) -> (i32, i32, i32) {
    %c0_i32 = arith.constant 0 : i32
    %c0_i32_0 = arith.constant 0 : i32
    return %arg0, %arg1, %c0_i32 : i32, i32, i32
  }
  func.func @transform_3(%arg0: i32, %arg1: i32, %arg2: i32) -> (i32, i32, i32) {
    %c0_i32 = arith.constant 0 : i32
    %c0_i32_0 = arith.constant 0 : i32
    return %arg0, %arg2, %c0_i32 : i32, i32, i32
  }
  func.func @transform_4(%arg0: i32, %arg1: i32, %arg2: i32) -> (i32, i32, i32) {
    %c0_i32 = arith.constant 0 : i32
    %c0_i32_0 = arith.constant 0 : i32
    return %arg0, %arg2, %c0_i32 : i32, i32, i32
  }
  func.func @transform_5(%arg0: i32, %arg1: i32, %arg2: i32) -> (i32, i32, i32) {
    %c0_i32 = arith.constant 0 : i32
    %c0_i32_0 = arith.constant 0 : i32
    return %arg0, %arg1, %c0_i32 : i32, i32, i32
  }
}

</mosaic_0001>

<bundles_post_ra>
// kernel: self_attention_block.1
= control target key start
LH: loop header
LB: loop body
LE: loop exit
PB: predicated region body
PF: predicated region fallthrough
CT: control target
= control target key end

     0   :  { %s3260_s20 = smov 0   ;;  %s3262_s21 = smov 0   ;;  %s4531_s0 = inlined_call_operand.<no memory space> [shape: f32[1], index: 0, kind: input, shape index: {}]   ;;  %s4532_s1 = inlined_call_operand.vmem [shape: bf16[2,208,4], index: 1, kind: input, shape index: {}]   ;;  %s4533_s2 = inlined_call_operand.vmem [shape: f32[2,208,32], index: 2, kind: input, shape index: {}]   ;;  %s4534_s3 = inlined_call_operand.vmem [shape: bf16[2,208,4], index: 3, kind: input, shape index: {}]   ;;  %s4535_s4 = inlined_call_operand.vmem [shape: bf16[2,208,32], index: 4, kind: input, shape index: {}]   ;;  %s4536_s5 = inlined_call_operand.vmem [shape: f32[2,208,32], index: 5, kind: output, shape index: {}]  }
   0x1   :  { %10 = sst [smem:[#allocation5]] %s4531_s0  ;;  %s3264_s22 = smov 0  }
   0x2 LB: > { %s35_s0 = sadd.s32 1, %s3218_s21  ;;  %p2849_p0 = scmp.ge.s32.totalorder %s3222_s22, 1  ;;  %s3222_s22 = sphi %s3264_s22, %s16_s22   ;;  %s3218_s21 = sphi %s3262_s21, %s4674_s21   ;;  %s3214_s20 = sphi %s3260_s20, %s4673_s20  }
   0x3   : > { %p37_p1 = scmp.ge.s32.totalorder %s35_s0, 2  ;;  %p267_p2 = scmp.lt.s32.totalorder %s3222_s22, 3 }
   0x5   : > { %s4676_s0 = smov (%p37_p1, %s35_s0), 0  ;;  %p268_p3 = pnand %p2849_p0, %p267_p2 }
   0x7   : > { %271 = sbr.rel (%p268_p3) target bundleno = 1001 (0x3e9), region = 40 }
   0xc   : > { %p331_p4 = scmp.lt.s32.totalorder %s3214_s20, 1  ;;  %v3224_v0 = vmov 0   ;;  %vm673_vm0 = vcmask 31744   ;;  %vm385_vm1 = vcmask 7168   ;;  %v3225_v40 = vmov -1e+30  }
   0xd   : > { %752 = vmatprep.subr.bf16.mxu0 %v3224_v0  ;;  %784 = vmatprep.mubr.bf16.mxu0 %v3224_v0  ;;  %386 = vst.msk [vmem:[#allocation2] sm:$0xff] %vm385_vm1, %v3225_v40  ;;  %387 = vst.msk [vmem:[#allocation2 + $0x8] sm:$0xff] %vm385_vm1, %v3225_v40  ;;  %v920_v41 = vlaneseq  ;;  %vm1113_vm3 = vcmask 654336   ;;  %vm438_vm4 = vcmask 261120   ;;  %s2413_s8 = sld [smem:[#allocation5]] }
   0xe   : > { %s4678_s20 = smov (!%p331_p4, %s3214_s20), 1  ;;  %2951 = vset.pattern.permute.xlu0 %v3224_v0  ;;  %2952 = vset.pattern.permute.xlu1 %v3224_v0  ;;  %388 = vst.msk [vmem:[#allocation2 + $0x10] sm:$0xff] %vm385_vm1, %v3225_v40  ;;  %389 = vst.msk [vmem:[#allocation2 + $0x18] sm:$0xff] %vm385_vm1, %v3225_v40 }
   0xf   : > { %2142 = vmatprep.subr.bf16.mxu1 %v3224_v0  ;;  %s3286_s23 = smul.u32 104, %s4678_s20  ;;  %390 = vst.msk [vmem:[#allocation2 + $0x20] sm:$0xff] %vm385_vm1, %v3225_v40  ;;  %391 = vst.msk [vmem:[#allocation2 + $0x28] sm:$0xff] %vm385_vm1, %v3225_v40  ;;  %v921_v42 = vand.u32 127, %v920_v41 }
  0x10   : > { %392 = vst.msk [vmem:[#allocation2 + $0x30] sm:$0xff] %vm385_vm1, %v3225_v40  ;;  %393 = vst.msk [vmem:[#allocation2 + $0x38] sm:$0xff] %vm385_vm1, %v3225_v40  ;;  %s2923_s9 = smul.u32 208, %s4678_s20 }
  0x11   : > { %s3292_s26 = scalar_lea.vmem %s4534_s3, %s3286_s23  ;;  %s3305_s29 = scalar_lea.vmem %s4532_s1, %s3286_s23  ;;  %394 = vst.msk [vmem:[#allocation2 + $0x40] sm:$0xff] %vm385_vm1, %v3225_v40  ;;  %395 = vst.msk [vmem:[#allocation2 + $0x48] sm:$0xff] %vm385_vm1, %v3225_v40  ;;  %v3402_v43 = vadd.s32 128, %v921_v42 }
  0x12   : > { %v2953_v1 = vld [vmem:[%s3292_s26 + $0x38] sm:$0xff]   ;;  %v2954_v3 = vld [vmem:[%s3292_s26 + $0x30] sm:$0xff]   ;;  %v2955_v5 = vld [vmem:[%s3292_s26 + $0x28] sm:$0xff]   ;;  %396 = vst.msk [vmem:[#allocation2 + $0x50] sm:$0xff] %vm385_vm1, %v3225_v40  ;;  %s3695_s7 = scalar_lea.vmem %s4535_s4, %s3286_s23  ;;  %s4409_s12 = scalar_lea.vmem %s4533_s2, %s2923_s9 }
  0x13   : > { %v735_v2 = vsel %vm673_vm0, %v2953_v1, 0  ;;  %v732_v4 = vsel %vm673_vm0, %v2954_v3, 0  ;;  %v729_v6 = vsel %vm673_vm0, %v2955_v5, 0  ;;  %v2956_v7 = vld [vmem:[%s3292_s26 + $0x20] sm:$0xff]   ;;  %v2957_v9 = vld [vmem:[%s3292_s26 + $0x18] sm:$0xff]   ;;  %v2958_v11 = vld [vmem:[%s3292_s26 + $0x10] sm:$0xff]   ;;  %s4418_s15 = scalar_lea.vmem %s4536_s5, %s2923_s9 }
  0x14   : > { %753 = vmatpush1.bf16.xpose.msra.mxu0 %v735_v2  ;;  %v726_v8 = vsel %vm673_vm0, %v2956_v7, 0  ;;  %v723_v10 = vsel %vm673_vm0, %v2957_v9, 0  ;;  %v720_v12 = vsel %vm673_vm0, %v2958_v11, 0  ;;  %v2959_v13 = vld [vmem:[%s3292_s26 + $0x8] sm:$0xff]   ;;  %v2960_v15 = vld [vmem:[%s3292_s26] sm:$0xff]   ;;  %v2962_v19 = vld [vmem:[%s3292_s26 + $0x58] sm:$0xff]  }
  0x15   : > { %754 = vmatprep.subr.bf16.mxu0 %v3224_v0  ;;  %v717_v14 = vsel %vm673_vm0, %v2959_v13, 0  ;;  %v714_v16 = vsel %vm673_vm0, %v2960_v15, 0  ;;  %v2961_v17 = vld [vmem:[%s3292_s26 + $0x60] sm:$0xff]   ;;  %v747_v20 = vsel %vm673_vm0, %v2962_v19, 0  ;;  %v2963_v21 = vld [vmem:[%s3292_s26 + $0x50] sm:$0xff]   ;;  %v2964_v23 = vld [vmem:[%s3292_s26 + $0x48] sm:$0xff]  }
  0x16   : > { %v750_v18 = vsel %vm673_vm0, %v2961_v17, 0  ;;  %v744_v22 = vsel %vm673_vm0, %v2963_v21, 0  ;;  %v741_v24 = vsel %vm673_vm0, %v2964_v23, 0  ;;  %v2965_v25 = vld [vmem:[%s3292_s26 + $0x40] sm:$0xff]   ;;  %v2967_v28 = vld [vmem:[%s3305_s29 + $0x8] sm:$0xff]   ;;  %v2968_v29 = vld [vmem:[%s3305_s29 + $0x10] sm:$0xff]  }
  0x17   : > { %v738_v26 = vsel %vm673_vm0, %v2965_v25, 0  ;;  %v2966_v27 = vld [vmem:[%s3305_s29] sm:$0xff]   ;;  %v2969_v30 = vld [vmem:[%s3305_s29 + $0x18] sm:$0xff]   ;;  %v2971_v32 = vld [vmem:[%s3305_s29 + $0x28] sm:$0xff]   ;;  %397 = vst.msk [vmem:[#allocation2 + $0x58] sm:$0xff] %vm385_vm1, %v3225_v40  ;;  %vm927_vm2 = vcmp.lt.s32.totalorder %v3402_v43, 200 }
  0x18   : > { %v2970_v31 = vld [vmem:[%s3305_s29 + $0x20] sm:$0xff]   ;;  %v2972_v33 = vld [vmem:[%s3305_s29 + $0x30] sm:$0xff]   ;;  %v2973_v34 = vld [vmem:[%s3305_s29 + $0x38] sm:$0xff]   ;;  %398 = vst.msk [vmem:[#allocation2 + $0x60] sm:$0xff] %vm385_vm1, %v3225_v40 }
  0x19   : > { %v2974_v35 = vld [vmem:[%s3305_s29 + $0x40] sm:$0xff]   ;;  %v2975_v36 = vld [vmem:[%s3305_s29 + $0x48] sm:$0xff]   ;;  %v2976_v37 = vld [vmem:[%s3305_s29 + $0x50] sm:$0xff]   ;;  %399 = vst.msk [vmem:[#allocation2 + $0x68] sm:$0xff] %vm385_vm1, %v3225_v40 }
  0x1a   : > { %v2977_v38 = vld [vmem:[%s3305_s29 + $0x58] sm:$0xff]   ;;  %v2978_v39 = vld [vmem:[%s3305_s29 + $0x60] sm:$0xff]   ;;  %400 = vst.msk [vmem:[#allocation2 + $0x70] sm:$0xff] %vm385_vm1, %v3225_v40  ;;  %401 = vst.msk [vmem:[#allocation2 + $0x78] sm:$0xff] %vm385_vm1, %v3225_v40 }
  0x1b   : > { %402 = vst.msk [vmem:[#allocation2 + $0x80] sm:$0xff] %vm385_vm1, %v3225_v40  ;;  %403 = vst.msk [vmem:[#allocation2 + $0x88] sm:$0xff] %vm385_vm1, %v3225_v40  ;;  %v2979_v43 = vld [vmem:[%s3695_s7 + $0x38] sm:$0xff]  }
  0x1c   : > { %755 = vmatpush1.bf16.xpose.msra.mxu0 %v732_v4  ;;  %404 = vst.msk [vmem:[#allocation2 + $0x90] sm:$0xff] %vm385_vm1, %v3225_v40  ;;  %405 = vst.msk [vmem:[#allocation2 + $0x98] sm:$0xff] %vm385_vm1, %v3225_v40  ;;  %2143 = vmatpush1.bf16.msra.mxu1 %v2979_v43 }
  0x1d   : > { %756 = vmatprep.subr.bf16.mxu0 %v3224_v0  ;;  %406 = vst.msk [vmem:[#allocation2 + $0xa0] sm:$0xff] %vm385_vm1, %v3225_v40  ;;  %407 = vst.msk [vmem:[#allocation2 + $0xa8] sm:$0xff] %vm385_vm1, %v3225_v40  ;;  %2144 = vmatprep.subr.bf16.mxu1 %v3224_v0 }
  0x1e   : > { %408 = vst.msk [vmem:[#allocation2 + $0xb0] sm:$0xff] %vm385_vm1, %v3225_v40  ;;  %409 = vst.msk [vmem:[#allocation2 + $0xb8] sm:$0xff] %vm385_vm1, %v3225_v40 }
  0x1f   : > { %410 = vst.msk [vmem:[#allocation2 + $0xc0] sm:$0xff] %vm385_vm1, %v3225_v40  ;;  %411 = vst.msk [vmem:[#allocation2 + $0xc8] sm:$0xff] %vm385_vm1, %v3225_v40 }
  0x24   : > { %757 = vmatpush1.bf16.xpose.msra.mxu0 %v729_v6 }
  0x25   : > { %758 = vmatprep.subr.bf16.mxu0 %v3224_v0 }
  0x2c   : > { %759 = vmatpush1.bf16.xpose.msra.mxu0 %v726_v8 }
  0x2d   : > { %760 = vmatprep.subr.bf16.mxu0 %v3224_v0 }
  0x34   : > { %761 = vmatpush1.bf16.xpose.msra.mxu0 %v723_v10 }
  0x35   : > { %762 = vmatprep.subr.bf16.mxu0 %v3224_v0 }
  0x3c   : > { %763 = vmatpush1.bf16.xpose.msra.mxu0 %v720_v12 }
  0x3d   : > { %764 = vmatprep.subr.bf16.mxu0 %v3224_v0 }
  0x44   : > { %765 = vmatpush1.bf16.xpose.msra.mxu0 %v717_v14 }
  0x45   : > { %766 = vmatprep.subr.bf16.mxu0 %v3224_v0 }
  0x4c   : > { %767 = vmatpush1.bf16.xpose.msra.mxu0 %v714_v16 }
  0x4d   : > { %774 = vmatprep.subr.bf16.mxu0 %v3224_v0 }
  0x54   : > { %775 = vmatpush2.bf16.xpose.msra.mxu0 %v750_v18  ;;  %v4537_v18 = vmov 0.0  }
  0x55   : > { %776 = vmatprep.subr.bf16.mxu0 %v3224_v0  ;;  %412 = vst.msk [vmem:[#allocation3] sm:$0xff] %vm385_vm1, %v4537_v18  ;;  %413 = vst.msk [vmem:[#allocation3 + $0x8] sm:$0xff] %vm385_vm1, %v4537_v18 }
  0x56   : > { %414 = vst.msk [vmem:[#allocation3 + $0x10] sm:$0xff] %vm385_vm1, %v4537_v18  ;;  %415 = vst.msk [vmem:[#allocation3 + $0x18] sm:$0xff] %vm385_vm1, %v4537_v18 }
  0x57   : > { %416 = vst.msk [vmem:[#allocation3 + $0x20] sm:$0xff] %vm385_vm1, %v4537_v18  ;;  %417 = vst.msk [vmem:[#allocation3 + $0x28] sm:$0xff] %vm385_vm1, %v4537_v18 }
  0x58   : > { %418 = vst.msk [vmem:[#allocation3 + $0x30] sm:$0xff] %vm385_vm1, %v4537_v18  ;;  %419 = vst.msk [vmem:[#allocation3 + $0x38] sm:$0xff] %vm385_vm1, %v4537_v18 }
  0x59   : > { %420 = vst.msk [vmem:[#allocation3 + $0x40] sm:$0xff] %vm385_vm1, %v4537_v18  ;;  %421 = vst.msk [vmem:[#allocation3 + $0x48] sm:$0xff] %vm385_vm1, %v4537_v18 }
  0x5a   : > { %422 = vst.msk [vmem:[#allocation3 + $0x50] sm:$0xff] %vm385_vm1, %v4537_v18  ;;  %423 = vst.msk [vmem:[#allocation3 + $0x58] sm:$0xff] %vm385_vm1, %v4537_v18 }
  0x5b   : > { %424 = vst.msk [vmem:[#allocation3 + $0x60] sm:$0xff] %vm385_vm1, %v4537_v18  ;;  %425 = vst.msk [vmem:[#allocation3 + $0x68] sm:$0xff] %vm385_vm1, %v4537_v18 }
  0x5c   : > { %777 = vmatpush2.bf16.xpose.msra.mxu0 %v747_v20  ;;  %426 = vst.msk [vmem:[#allocation3 + $0x70] sm:$0xff] %vm385_vm1, %v4537_v18  ;;  %427 = vst.msk [vmem:[#allocation3 + $0x78] sm:$0xff] %vm385_vm1, %v4537_v18 }
  0x5d   : > { %778 = vmatprep.subr.bf16.mxu0 %v3224_v0  ;;  %428 = vst.msk [vmem:[#allocation3 + $0x80] sm:$0xff] %vm385_vm1, %v4537_v18  ;;  %429 = vst.msk [vmem:[#allocation3 + $0x88] sm:$0xff] %vm385_vm1, %v4537_v18 }
  0x5e   : > { %430 = vst.msk [vmem:[#allocation3 + $0x90] sm:$0xff] %vm385_vm1, %v4537_v18  ;;  %431 = vst.msk [vmem:[#allocation3 + $0x98] sm:$0xff] %vm385_vm1, %v4537_v18 }
  0x5f   : > { %432 = vst.msk [vmem:[#allocation3 + $0xa0] sm:$0xff] %vm385_vm1, %v4537_v18  ;;  %433 = vst.msk [vmem:[#allocation3 + $0xa8] sm:$0xff] %vm385_vm1, %v4537_v18 }
  0x60   : > { %434 = vst.msk [vmem:[#allocation3 + $0xb0] sm:$0xff] %vm385_vm1, %v4537_v18  ;;  %435 = vst.msk [vmem:[#allocation3 + $0xb8] sm:$0xff] %vm385_vm1, %v4537_v18 }
  0x61   : > { %436 = vst.msk [vmem:[#allocation3 + $0xc0] sm:$0xff] %vm385_vm1, %v4537_v18  ;;  %437 = vst.msk [vmem:[#allocation3 + $0xc8] sm:$0xff] %vm385_vm1, %v4537_v18  ;;  %v2988_v18 = vld [vmem:[%s3695_s7 + $0x58] sm:$0xff]  }
  0x64   : > { %779 = vmatpush2.bf16.xpose.msra.mxu0 %v744_v22 }
  0x65   : > { %780 = vmatprep.subr.bf16.mxu0 %v3224_v0 }
  0x6c   : > { %781 = vmatpush2.bf16.xpose.msra.mxu0 %v741_v24 }
  0x6d   : > { %782 = vmatprep.subr.bf16.mxu0 %v3224_v0 }
  0x74   : > { %783 = vmatpush2.bf16.xpose.msra.mxu0 %v738_v26 }
  0x7b   : > { %2881 = vmatmul.mubr.msk.bf16.vlgmr.msra.gmra.mxu0 %vm673_vm0, %v2966_v27 }
  0x7c   : > { %794 = vmatprep.mubr.bf16.mxu0 %v3224_v0 }
  0x83   : > { %2882 = vmatmul.mubr.msk.bf16.gmra.mxu0 %vm673_vm0, %v2967_v28 }
  0x84   : > { %804 = vmatprep.mubr.bf16.mxu0 %v3224_v0 }
  0x8b   : > { %2883 = vmatmul.mubr.msk.bf16.gmra.mxu0 %vm673_vm0, %v2968_v29 }
  0x8c   : > { %814 = vmatprep.mubr.bf16.mxu0 %v3224_v0 }
  0x93   : > { %2884 = vmatmul.mubr.msk.bf16.gmra.mxu0 %vm673_vm0, %v2969_v30 }
  0x94   : > { %824 = vmatprep.mubr.bf16.mxu0 %v3224_v0 }
  0x9b   : > { %2885 = vmatmul.mubr.msk.bf16.gmra.mxu0 %vm673_vm0, %v2970_v31 }
  0x9c   : > { %834 = vmatprep.mubr.bf16.mxu0 %v3224_v0 }
  0xa3   : > { %2886 = vmatmul.mubr.msk.bf16.gmra.mxu0 %vm673_vm0, %v2971_v32 }
  0xa4   : > { %844 = vmatprep.mubr.bf16.mxu0 %v3224_v0 }
  0xab   : > { %2887 = vmatmul.mubr.msk.bf16.gmra.mxu0 %vm673_vm0, %v2972_v33 }
  0xac   : > { %854 = vmatprep.mubr.bf16.mxu0 %v3224_v0 }
  0xb3   : > { %2888 = vmatmul.mubr.msk.bf16.gmra.mxu0 %vm673_vm0, %v2973_v34 }
  0xb4   : > { %864 = vmatprep.mubr.bf16.mxu0 %v3224_v0 }
  0xbb   : > { %2889 = vmatmul.mubr.msk.bf16.gmra.mxu0 %vm673_vm0, %v2974_v35 }
  0xbc   : > { %874 = vmatprep.mubr.bf16.mxu0 %v3224_v0 }
  0xc3   : > { %2890 = vmatmul.mubr.msk.bf16.gmra.mxu0 %vm673_vm0, %v2975_v36 }
  0xc4   : > { %884 = vmatprep.mubr.bf16.mxu0 %v3224_v0 }
  0xcb   : > { %2891 = vmatmul.mubr.msk.bf16.gmra.mxu0 %vm673_vm0, %v2976_v37 }
  0xcc   : > { %894 = vmatprep.mubr.bf16.mxu0 %v3224_v0 }
  0xd3   : > { %2892 = vmatmul.mubr.msk.bf16.gmra.mxu0 %vm673_vm0, %v2977_v38 }
  0xd4   : > { %904 = vmatprep.mubr.bf16.mxu0 %v3224_v0 }
  0xdb   : > { %2893 = vmatmul.mubr.msk.bf16.gmra.mxu0 %vm673_vm0, %v2978_v39 }
 0x13b   : > { %v3404_v44 = vpop.f32.mrf.mxu0 }
 0x13d   : > { %v788_v45 = vpop.f32.mrf.mxu0 }
 0x13e   : > { %v3409_v46 = vsel %vm927_vm2, %v788_v45, -1e+30 }
 0x13f   : > { %v3411_v47 = vpop.f32.mrf.mxu0  ;;  %v1114_v48 = vsel %vm1113_vm3, %v3409_v46, -inf }
 0x140   : > { %v1115_v49 = vmax.f32 %v3404_v44, %v1114_v48 }
 0x141   : > { %v792_v50 = vpop.f32.mrf.mxu0 }
 0x142   : > { %v3418_v51 = vsel %vm927_vm2, %v792_v50, -1e+30  ;;  %1116 = vmax.xlane.f32.xlu0 %v1115_v49 }
 0x143   : > { %v1118_v52 = vsel %vm1113_vm3, %v3418_v51, -inf  ;;  %v3422_v53 = vpop.f32.mrf.mxu0 }
 0x144   : > { %v1119_v54 = vmax.f32 %v3411_v47, %v1118_v52 }
 0x145   : > { %v798_v55 = vpop.f32.mrf.mxu0 }
 0x146   : > { %v3427_v56 = vsel %vm927_vm2, %v798_v55, -1e+30  ;;  %1120 = vmax.xlane.f32.xlu0 %v1119_v54 }
 0x147   : > { %v3429_v57 = vpop.f32.mrf.mxu0  ;;  %v1122_v58 = vsel %vm1113_vm3, %v3427_v56, -inf }
 0x148   : > { %v1123_v59 = vmax.f32 %v3422_v53, %v1122_v58 }
 0x149   : > { %v802_v60 = vpop.f32.mrf.mxu0 }
 0x14a   : > { %v3436_v61 = vsel %vm927_vm2, %v802_v60, -1e+30  ;;  %1124 = vmax.xlane.f32.xlu1 %v1123_v59 }
 0x14b   : > { %v1126_v62 = vsel %vm1113_vm3, %v3436_v61, -inf  ;;  %v3440_v63 = vpop.f32.mrf.mxu0 }
 0x14c   : > { %v1127_v1 = vmax.f32 %v3429_v57, %v1126_v62 }
 0x14d   : > { %v808_v2 = vpop.f32.mrf.mxu0 }
 0x14e   : > { %v3445_v3 = vsel %vm927_vm2, %v808_v2, -1e+30  ;;  %1128 = vmax.xlane.f32.xlu1 %v1127_v1 }
 0x14f   : > { %v1130_v4 = vsel %vm1113_vm3, %v3445_v3, -inf  ;;  %v3449_v5 = vpop.f32.mrf.mxu0 }
 0x150   : > { %v1131_v6 = vmax.f32 %v3440_v63, %v1130_v4 }
 0x151   : > { %v812_v7 = vpop.f32.mrf.mxu0 }
 0x152   : > { %v3454_v8 = vsel %vm927_vm2, %v812_v7, -1e+30  ;;  %1132 = vmax.xlane.f32.xlu0 %v1131_v6 }
 0x153   : > { %v1134_v9 = vsel %vm1113_vm3, %v3454_v8, -inf  ;;  %v3458_v10 = vpop.f32.mrf.mxu0 }
 0x154   : > { %v1135_v11 = vmax.f32 %v3449_v5, %v1134_v9 }
 0x155   : > { %v818_v12 = vpop.f32.mrf.mxu0 }
 0x156   : > { %v3463_v13 = vsel %vm927_vm2, %v818_v12, -1e+30  ;;  %1136 = vmax.xlane.f32.xlu1 %v1135_v11 }
 0x157   : > { %v1138_v14 = vsel %vm1113_vm3, %v3463_v13, -inf  ;;  %v3467_v15 = vpop.f32.mrf.mxu0 }
 0x158   : > { %v1139_v16 = vmax.f32 %v3458_v10, %v1138_v14 }
 0x159   : > { %v822_v17 = vpop.f32.mrf.mxu0 }
 0x15a   : > { %v3524_v19 = vsel %vm927_vm2, %v822_v17, -1e+30  ;;  %1140 = vmax.xlane.f32.xlu0 %v1139_v16 }
 0x15b   : > { %v1142_v20 = vsel %vm1113_vm3, %v3524_v19, -inf  ;;  %v3528_v21 = vpop.f32.mrf.mxu0 }
 0x15c   : > { %4579 = vst [vmem:[#allocation6_spill] sm:$0xff] %v3528_v21  ;;  %v1143_v22 = vmax.f32 %v3467_v15, %v1142_v20 }
 0x15d   : > { %v828_v23 = vpop.f32.mrf.mxu0 }
 0x15e   : > { %v3533_v24 = vsel %vm927_vm2, %v828_v23, -1e+30  ;;  %1144 = vmax.xlane.f32.xlu1 %v1143_v22 }
 0x15f   : > { %4580 = vst [vmem:[#allocation7_spill] sm:$0xff] %v3533_v24  ;;  %v1146_v25 = vsel %vm1113_vm3, %v3533_v24, -inf  ;;  %v3537_v26 = vpop.f32.mrf.mxu0 }
 0x160   : > { %4581 = vst [vmem:[#allocation8_spill] sm:$0xff] %v3537_v26  ;;  %v1147_v27 = vmax.f32 %v3528_v21, %v1146_v25 }
 0x161   : > { %v832_v28 = vpop.f32.mrf.mxu0 }
 0x162   : > { %v3542_v29 = vsel %vm927_vm2, %v832_v28, -1e+30  ;;  %1148 = vmax.xlane.f32.xlu0 %v1147_v27 }
 0x163   : > { %4582 = vst [vmem:[#allocation9_spill] sm:$0xff] %v3542_v29  ;;  %v1150_v30 = vsel %vm1113_vm3, %v3542_v29, -inf  ;;  %v3546_v31 = vpop.f32.mrf.mxu0 }
 0x164   : > { %4583 = vst [vmem:[#allocation10_spill] sm:$0xff] %v3546_v31  ;;  %v1151_v32 = vmax.f32 %v3537_v26, %v1150_v30  ;;  %v3909_v26 = vld [vmem:[#allocation2 + $0xa8] sm:$0xff] }
 0x165   : > { %v838_v33 = vpop.f32.mrf.mxu0 }
 0x166   : > { %v3551_v34 = vsel %vm927_vm2, %v838_v33, -1e+30  ;;  %1152 = vmax.xlane.f32.xlu1 %v1151_v32 }
 0x167   : > { %4584 = vst [vmem:[#allocation11_spill] sm:$0xff] %v3551_v34  ;;  %v1154_v35 = vsel %vm1113_vm3, %v3551_v34, -inf  ;;  %v3555_v36 = vpop.f32.mrf.mxu0  ;;  %v3899_v34 = vld [vmem:[#allocation2 + $0xa0] sm:$0xff] }
 0x168   : > { %4585 = vst [vmem:[#allocation12_spill] sm:$0xff] %v3555_v36  ;;  %v1155_v37 = vmax.f32 %v3546_v31, %v1154_v35  ;;  %4617 = vst [vmem:[#allocation44_spill] sm:$0xff] %v3899_v34 }
 0x169   : > { %v842_v38 = vpop.f32.mrf.mxu0 }
 0x16a   : > { %v3560_v39 = vsel %vm927_vm2, %v842_v38, -1e+30  ;;  %1156 = vmax.xlane.f32.xlu0 %v1155_v37 }
 0x16b   : > { %4586 = vst [vmem:[#allocation13_spill] sm:$0xff] %v3560_v39  ;;  %v1158_v40 = vsel %vm1113_vm3, %v3560_v39, -inf  ;;  %v3564_v41 = vpop.f32.mrf.mxu0  ;;  %v3891_v39 = vld [vmem:[#allocation2 + $0x98] sm:$0xff] }
 0x16c   : > { %4587 = vst [vmem:[#allocation14_spill] sm:$0xff] %v3564_v41  ;;  %v1159_v42 = vmax.f32 %v3555_v36, %v1158_v40  ;;  %4615 = vst [vmem:[#allocation42_spill] sm:$0xff] %v3891_v39 }
 0x16d   : > { %v848_v45 = vpop.f32.mrf.mxu0 }
 0x16e   : > { %v3569_v48 = vsel %vm927_vm2, %v848_v45, -1e+30  ;;  %1160 = vmax.xlane.f32.xlu1 %v1159_v42 }
 0x16f   : > { %4588 = vst [vmem:[#allocation15_spill] sm:$0xff] %v3569_v48  ;;  %v1162_v49 = vsel %vm1113_vm3, %v3569_v48, -inf  ;;  %v3573_v50 = vpop.f32.mrf.mxu0  ;;  %v3883_v48 = vld [vmem:[#allocation2 + $0x90] sm:$0xff] }
 0x170   : > { %4589 = vst [vmem:[#allocation16_spill] sm:$0xff] %v3573_v50  ;;  %v1163_v52 = vmax.f32 %v3564_v41, %v1162_v49 }
 0x171   : > { %v852_v54 = vpop.f32.mrf.mxu0 }
 0x172   : > { %v3578_v55 = vsel %vm927_vm2, %v852_v54, -1e+30  ;;  %1164 = vmax.xlane.f32.xlu0 %v1163_v52 }
 0x173   : > { %4590 = vst [vmem:[#allocation17_spill] sm:$0xff] %v3578_v55  ;;  %v1166_v58 = vsel %vm1113_vm3, %v3578_v55, -inf  ;;  %v3582_v59 = vpop.f32.mrf.mxu0  ;;  %v3875_v55 = vld [vmem:[#allocation2 + $0x88] sm:$0xff] }
 0x174   : > { %4591 = vst [vmem:[#allocation18_spill] sm:$0xff] %v3582_v59  ;;  %v1167_v60 = vmax.f32 %v3573_v50, %v1166_v58 }
 0x175   : > { %v858_v62 = vpop.f32.mrf.mxu0 }
 0x176   : > { %v3587_v1 = vsel %vm927_vm2, %v858_v62, -1e+30  ;;  %1168 = vmax.xlane.f32.xlu1 %v1167_v60 }
 0x177   : > { %4592 = vst [vmem:[#allocation19_spill] sm:$0xff] %v3587_v1  ;;  %v1170_v2 = vsel %vm1113_vm3, %v3587_v1, -inf  ;;  %v3591_v4 = vpop.f32.mrf.mxu0  ;;  %v3867_v1 = vld [vmem:[#allocation2 + $0x80] sm:$0xff] }
 0x178   : > { %4593 = vst [vmem:[#allocation20_spill] sm:$0xff] %v3591_v4  ;;  %v1171_v6 = vmax.f32 %v3582_v59, %v1170_v2 }
 0x179   : > { %v862_v7 = vpop.f32.mrf.mxu0 }
 0x17a   : > { %v3596_v9 = vsel %vm927_vm2, %v862_v7, -1e+30  ;;  %1172 = vmax.xlane.f32.xlu0 %v1171_v6 }
 0x17b   : > { %4594 = vst [vmem:[#allocation21_spill] sm:$0xff] %v3596_v9  ;;  %v1174_v11 = vsel %vm1113_vm3, %v3596_v9, -inf  ;;  %v3600_v12 = vpop.f32.mrf.mxu0  ;;  %v3859_v9 = vld [vmem:[#allocation2 + $0x78] sm:$0xff] }
 0x17c   : > { %4595 = vst [vmem:[#allocation22_spill] sm:$0xff] %v3600_v12  ;;  %v1175_v14 = vmax.f32 %v3591_v4, %v1174_v11 }
 0x17d   : > { %v868_v16 = vpop.f32.mrf.mxu0 }
 0x17e   : > { %v3605_v17 = vsel %vm927_vm2, %v868_v16, -1e+30  ;;  %1176 = vmax.xlane.f32.xlu1 %v1175_v14 }
 0x17f   : > { %4596 = vst [vmem:[#allocation23_spill] sm:$0xff] %v3605_v17  ;;  %v1178_v20 = vsel %vm1113_vm3, %v3605_v17, -inf  ;;  %v3609_v22 = vpop.f32.mrf.mxu0  ;;  %v3851_v17 = vld [vmem:[#allocation2 + $0x70] sm:$0xff] }
 0x180   : > { %4597 = vst [vmem:[#allocation24_spill] sm:$0xff] %v3609_v22  ;;  %v1179_v23 = vmax.f32 %v3600_v12, %v1178_v20 }
 0x181   : > { %v872_v25 = vpop.f32.mrf.mxu0 }
 0x182   : > { %v3614_v27 = vsel %vm927_vm2, %v872_v25, -1e+30  ;;  %1180 = vmax.xlane.f32.xlu0 %v1179_v23 }
 0x183   : > { %4598 = vst [vmem:[#allocation25_spill] sm:$0xff] %v3614_v27  ;;  %v1182_v28 = vsel %vm1113_vm3, %v3614_v27, -inf  ;;  %v3618_v30 = vpop.f32.mrf.mxu0  ;;  %v3843_v27 = vld [vmem:[#allocation2 + $0x68] sm:$0xff] }
 0x184   : > { %4599 = vst [vmem:[#allocation26_spill] sm:$0xff] %v3618_v30  ;;  %v1183_v32 = vmax.f32 %v3609_v22, %v1182_v28 }
 0x185   : > { %v878_v33 = vpop.f32.mrf.mxu0 }
 0x186   : > { %v3623_v35 = vsel %vm927_vm2, %v878_v33, -1e+30  ;;  %1184 = vmax.xlane.f32.xlu1 %v1183_v32 }
 0x187   : > { %4600 = vst [vmem:[#allocation27_spill] sm:$0xff] %v3623_v35  ;;  %v1186_v37 = vsel %vm1113_vm3, %v3623_v35, -inf  ;;  %v3627_v38 = vpop.f32.mrf.mxu0 }
 0x188   : > { %4601 = vst [vmem:[#allocation28_spill] sm:$0xff] %v3627_v38  ;;  %v1187_v40 = vmax.f32 %v3618_v30, %v1186_v37 }
 0x189   : > { %v882_v42 = vpop.f32.mrf.mxu0 }
 0x18a   : > { %v3632_v45 = vsel %vm927_vm2, %v882_v42, -1e+30  ;;  %1188 = vmax.xlane.f32.xlu0 %v1187_v40 }
 0x18b   : > { %4602 = vst [vmem:[#allocation29_spill] sm:$0xff] %v3632_v45  ;;  %v1190_v49 = vsel %vm1113_vm3, %v3632_v45, -inf  ;;  %v3636_v52 = vpop.f32.mrf.mxu0 }
 0x18c   : > { %4603 = vst [vmem:[#allocation30_spill] sm:$0xff] %v3636_v52  ;;  %v1191_v54 = vmax.f32 %v3627_v38, %v1190_v49  ;;  %v3827_v38 = vld [vmem:[#allocation2 + $0x58] sm:$0xff] }
 0x18d   : > { %v888_v58 = vpop.f32.mrf.mxu0 }
 0x18e   : > { %v3641_v60 = vsel %vm927_vm2, %v888_v58, -1e+30  ;;  %1192 = vmax.xlane.f32.xlu1 %v1191_v54 }
 0x18f   : > { %4604 = vst [vmem:[#allocation31_spill] sm:$0xff] %v3641_v60  ;;  %v1194_v62 = vsel %vm1113_vm3, %v3641_v60, -inf  ;;  %v3645_v2 = vpop.f32.mrf.mxu0 }
 0x190   : > { %4605 = vst [vmem:[#allocation32_spill] sm:$0xff] %v3645_v2  ;;  %v1195_v6 = vmax.f32 %v3636_v52, %v1194_v62  ;;  %v3817_v52 = vld [vmem:[#allocation2 + $0x50] sm:$0xff] }
 0x191   : > { %v892_v7 = vpop.f32.mrf.mxu0 }
 0x192   : > { %v3650_v11 = vsel %vm927_vm2, %v892_v7, -1e+30  ;;  %1196 = vmax.xlane.f32.xlu0 %v1195_v6 }
 0x193   : > { %4606 = vst [vmem:[#allocation33_spill] sm:$0xff] %v3650_v11  ;;  %v1198_v14 = vsel %vm1113_vm3, %v3650_v11, -inf  ;;  %v3654_v16 = vpop.f32.mrf.mxu0 }
 0x194   : > { %4607 = vst [vmem:[#allocation34_spill] sm:$0xff] %v3654_v16  ;;  %v1199_v20 = vmax.f32 %v3645_v2, %v1198_v14  ;;  %v3807_v2 = vld [vmem:[#allocation2 + $0x48] sm:$0xff] }
 0x195   : > { %v898_v23 = vpop.f32.mrf.mxu0 }
 0x196   : > { %v3659_v25 = vsel %vm927_vm2, %v898_v23, -1e+30  ;;  %1200 = vmax.xlane.f32.xlu1 %v1199_v20 }
 0x197   : > { %4608 = vst [vmem:[#allocation35_spill] sm:$0xff] %v3659_v25  ;;  %v1202_v28 = vsel %vm1113_vm3, %v3659_v25, -inf  ;;  %v3663_v32 = vpop.f32.mrf.mxu0 }
 0x198   : > { %4609 = vst [vmem:[#allocation36_spill] sm:$0xff] %v3663_v32  ;;  %v1203_v33 = vmax.f32 %v3654_v16, %v1202_v28  ;;  %v3797_v16 = vld [vmem:[#allocation2 + $0x40] sm:$0xff] }
 0x199   : > { %v902_v37 = vpop.f32.mrf.mxu0 }
 0x19a   : > { %v3668_v40 = vsel %vm927_vm2, %v902_v37, -1e+30  ;;  %1204 = vmax.xlane.f32.xlu0 %v1203_v33  ;;  %v2980_v37 = vld [vmem:[%s3695_s7 + $0x30] sm:$0xff]  }
 0x19b   : > { %4610 = vst [vmem:[#allocation37_spill] sm:$0xff] %v3668_v40  ;;  %v1206_v42 = vsel %vm1113_vm3, %v3668_v40, -inf  ;;  %v3672_v49 = vpop.f32.mrf.mxu0  ;;  %2145 = vmatpush1.bf16.msra.mxu1 %v2980_v37  ;;  %v3717_v37 = vld [vmem:[#allocation2 + $0x8] sm:$0xff]  ;;  %v2991_v40 = vld [vmem:[%s3695_s7 + $0x40] sm:$0xff]  }
 0x19c   : > { %4611 = vst [vmem:[#allocation38_spill] sm:$0xff] %v3672_v49  ;;  %v1207_v54 = vmax.f32 %v3663_v32, %v1206_v42  ;;  %2146 = vmatprep.subr.bf16.mxu1 %v3224_v0  ;;  %v2981_v42 = vld [vmem:[%s3695_s7 + $0x28] sm:$0xff]  }
 0x19d   : > { %v908_v58 = vpop.f32.mrf.mxu0 }
 0x19e   : > { %v3677_v62 = vsel %vm927_vm2, %v908_v58, -1e+30  ;;  %1208 = vmax.xlane.f32.xlu1 %v1207_v54  ;;  %v2982_v54 = vld [vmem:[%s3695_s7 + $0x20] sm:$0xff]   ;;  %v2983_v58 = vld [vmem:[%s3695_s7 + $0x18] sm:$0xff]  }
 0x19f   : > { %4612 = vst [vmem:[#allocation39_spill] sm:$0xff] %v3677_v62  ;;  %v1210_v6 = vsel %vm1113_vm3, %v3677_v62, -inf  ;;  %v3681_v7 = vpop.f32.mrf.mxu0  ;;  %2147 = vmatpush1.bf16.msra.mxu1 %v2981_v42  ;;  %v2990_v62 = vld [vmem:[%s3695_s7 + $0x48] sm:$0xff]  }
 0x1a0   : > { %4613 = vst [vmem:[#allocation40_spill] sm:$0xff] %v3681_v7  ;;  %v1211_v14 = vmax.f32 %v3672_v49, %v1210_v6  ;;  %2148 = vmatprep.subr.bf16.mxu1 %v3224_v0  ;;  %v2984_v6 = vld [vmem:[%s3695_s7 + $0x10] sm:$0xff]  }
 0x1a1   : > { %v912_v20 = vpop.f32.mrf.mxu0 }
 0x1a2   : > { %v3686_v23 = vsel %vm927_vm2, %v912_v20, -1e+30  ;;  %1212 = vmax.xlane.f32.xlu0 %v1211_v14  ;;  %v2985_v14 = vld [vmem:[%s3695_s7 + $0x8] sm:$0xff]   ;;  %v3710_v20 = vld [vmem:[#allocation2] sm:$0xff] }
 0x1a3   : > { %4614 = vst [vmem:[#allocation41_spill] sm:$0xff] %v3686_v23  ;;  %v1214_v28 = vsel %vm1113_vm3, %v3686_v23, -inf  ;;  %2149 = vmatpush1.bf16.msra.mxu1 %v2982_v54  ;;  %v2989_v23 = vld [vmem:[%s3695_s7 + $0x50] sm:$0xff]  }
 0x1a4   : > { %v1215_v33 = vmax.f32 %v3681_v7, %v1214_v28  ;;  %2150 = vmatprep.subr.bf16.mxu1 %v3224_v0 }
 0x1a6   : > { %1216 = vmax.xlane.f32.xlu1 %v1215_v33  ;;  %v2986_v33 = vld [vmem:[%s3695_s7] sm:$0xff]  }
 0x1a7   : > { %2151 = vmatpush1.bf16.msra.mxu1 %v2983_v58  ;;  %v2987_v58 = vld [vmem:[%s3695_s7 + $0x60] sm:$0xff]  }
 0x1a8   : > { %2152 = vmatprep.subr.bf16.mxu1 %v3224_v0 }
 0x1ab   : > { %2153 = vmatpush1.bf16.msra.mxu1 %v2984_v6 }
 0x1ac   : > { %2154 = vmatprep.subr.bf16.mxu1 %v3224_v0 }
 0x1af   : > { %2155 = vmatpush1.bf16.msra.mxu1 %v2985_v14  ;;  %v3729_v14 = vld [vmem:[#allocation2 + $0x10] sm:$0xff] }
 0x1b0   : > { %2156 = vmatprep.subr.bf16.mxu1 %v3224_v0 }
 0x1b3   : > { %2157 = vmatpush1.bf16.msra.mxu1 %v2986_v33 }
 0x1b4   : > { %2164 = vmatprep.subr.bf16.mxu1 %v3224_v0 }
 0x1b7   : > { %2165 = vmatpush2.bf16.msra.mxu1 %v2987_v58 }
 0x1b8   : > { %2166 = vmatprep.subr.bf16.mxu1 %v3224_v0 }
 0x1bb   : > { %2167 = vmatpush2.bf16.msra.mxu1 %v2988_v18 }
 0x1bc   : > { %2168 = vmatprep.subr.bf16.mxu1 %v3224_v0 }
 0x1bf   : > { %2169 = vmatpush2.bf16.msra.mxu1 %v2989_v23 }
 0x1c0   : > { %2170 = vmatprep.subr.bf16.mxu1 %v3224_v0 }
 0x1c3   : > { %2171 = vmatpush2.bf16.msra.mxu1 %v2990_v62 }
 0x1c4   : > { %2172 = vmatprep.subr.bf16.mxu1 %v3224_v0  ;;  %v3787_v0 = vld [vmem:[#allocation2 + $0x38] sm:$0xff] }
 0x1c7   : > { %2173 = vmatpush2.bf16.msra.mxu1 %v2991_v40 }
 0x1cb   : > { %v1117_v28 = vpop.xlane.xlu0 %1116 }
 0x1cc   : > { %v3715_v43 = vmax.f32 %v3710_v20, %v1117_v28 }
 0x1ce   : > { %2332 = vst.msk [vmem:[#allocation2] sm:$0xff] %vm385_vm1, %v3715_v43  ;;  %1324 = vperm.xlu0 %2951, %v3715_v43  }
 0x1cf   : > { %v1121_v54 = vpop.xlane.xlu0 %1120 }
 0x1d0   : > { %v3727_v6 = vmax.f32 %v3717_v37, %v1121_v54  ;;  %v3741_v54 = vld [vmem:[#allocation2 + $0x18] sm:$0xff] }
 0x1d2   : > { %2333 = vst.msk [vmem:[#allocation2 + $0x8] sm:$0xff] %vm385_vm1, %v3727_v6  ;;  %1329 = vperm.xlu1 %2952, %v3727_v6  }
 0x1d3   : > { %v1125_v33 = vpop.xlane.xlu1 %1124 }
 0x1d4   : > { %v3739_v42 = vmax.f32 %v3729_v14, %v1125_v33  ;;  %v3753_v33 = vld [vmem:[#allocation2 + $0x20] sm:$0xff] }
 0x1d6   : > { %2334 = vst.msk [vmem:[#allocation2 + $0x10] sm:$0xff] %vm385_vm1, %v3739_v42  ;;  %1334 = vperm.xlu1 %2952, %v3739_v42  }
 0x1d7   : > { %v1129_v28 = vpop.xlane.xlu1 %1128 }
 0x1d8   : > { %v3751_v7 = vmax.f32 %v3741_v54, %v1129_v28  ;;  %v3765_v28 = vld [vmem:[#allocation2 + $0x28] sm:$0xff] }
 0x1da   : > { %2335 = vst.msk [vmem:[#allocation2 + $0x18] sm:$0xff] %vm385_vm1, %v3751_v7  ;;  %1339 = vperm.xlu1 %2952, %v3751_v7  }
 0x1db   : > { %v1133_v58 = vpop.xlane.xlu0 %1132 }
 0x1dc   : > { %v3763_v49 = vmax.f32 %v3753_v33, %v1133_v58  ;;  %v3777_v58 = vld [vmem:[#allocation2 + $0x30] sm:$0xff] }
 0x1de   : > { %2336 = vst.msk [vmem:[#allocation2 + $0x20] sm:$0xff] %vm385_vm1, %v3763_v49  ;;  %1344 = vperm.xlu1 %2952, %v3763_v49  }
 0x1df   : > { %v1137_v18 = vpop.xlane.xlu1 %1136 }
 0x1e0   : > { %v3775_v32 = vmax.f32 %v3765_v28, %v1137_v18 }
 0x1e2   : > { %2337 = vst.msk [vmem:[#allocation2 + $0x28] sm:$0xff] %vm385_vm1, %v3775_v32  ;;  %1349 = vperm.xlu1 %2952, %v3775_v32  }
 0x1e3   : > { %v1141_v23 = vpop.xlane.xlu0 %1140 }
 0x1e4   : > { %v3785_v25 = vmax.f32 %v3777_v58, %v1141_v23 }
 0x1e6   : > { %2338 = vst.msk [vmem:[#allocation2 + $0x30] sm:$0xff] %vm385_vm1, %v3785_v25  ;;  %1354 = vperm.xlu1 %2952, %v3785_v25  }
 0x1e7   : > { %v1145_v40 = vpop.xlane.xlu1 %1144 }
 0x1e8   : > { %v3795_v62 = vmax.f32 %v3787_v0, %v1145_v40 }
 0x1ea   : > { %2339 = vst.msk [vmem:[#allocation2 + $0x38] sm:$0xff] %vm385_vm1, %v3795_v62  ;;  %1359 = vperm.xlu1 %2952, %v3795_v62  }
 0x1eb   : > { %v1149_v18 = vpop.xlane.xlu0 %1148 }
 0x1ec   : > { %v3805_v11 = vmax.f32 %v3797_v16, %v1149_v18  ;;  %v3835_v18 = vld [vmem:[#allocation2 + $0x60] sm:$0xff] }
 0x1ee   : > { %2340 = vst.msk [vmem:[#allocation2 + $0x40] sm:$0xff] %vm385_vm1, %v3805_v11  ;;  %1364 = vperm.xlu1 %2952, %v3805_v11  }
 0x1ef   : > { %v1153_v23 = vpop.xlane.xlu1 %1152 }
 0x1f0   : > { %v3815_v60 = vmax.f32 %v3807_v2, %v1153_v23 }
 0x1f2   : > { %2341 = vst.msk [vmem:[#allocation2 + $0x48] sm:$0xff] %vm385_vm1, %v3815_v60  ;;  %1369 = vperm.xlu0 %2951, %v3815_v60  }
 0x1f3   : > { %v1157_v40 = vpop.xlane.xlu0 %1156 }
 0x1f4   : > { %v3825_v45 = vmax.f32 %v3817_v52, %v1157_v40 }
 0x1f6   : > { %2342 = vst.msk [vmem:[#allocation2 + $0x50] sm:$0xff] %vm385_vm1, %v3825_v45  ;;  %1374 = vperm.xlu1 %2952, %v3825_v45  }
 0x1f7   : > { %v1161_v23 = vpop.xlane.xlu1 %1160 }
 0x1f8   : > { %v3833_v35 = vmax.f32 %v3827_v38, %v1161_v23 }
 0x1fa   : > { %2343 = vst.msk [vmem:[#allocation2 + $0x58] sm:$0xff] %vm385_vm1, %v3833_v35  ;;  %1379 = vperm.xlu0 %2951, %v3833_v35  }
 0x1fb   : > { %v1165_v40 = vpop.xlane.xlu0 %1164 }
 0x1fc   : > { %v3841_v30 = vmax.f32 %v3835_v18, %v1165_v40 }
 0x1fe   : > { %2344 = vst.msk [vmem:[#allocation2 + $0x60] sm:$0xff] %vm385_vm1, %v3841_v30  ;;  %1384 = vperm.xlu1 %2952, %v3841_v30  }
 0x1ff   : > { %v1169_v23 = vpop.xlane.xlu1 %1168 }
 0x200   : > { %v3849_v22 = vmax.f32 %v3843_v27, %v1169_v23 }
 0x202   : > { %2345 = vst.msk [vmem:[#allocation2 + $0x68] sm:$0xff] %vm385_vm1, %v3849_v22  ;;  %1389 = vperm.xlu0 %2951, %v3849_v22  }
 0x203   : > { %v1173_v40 = vpop.xlane.xlu0 %1172 }
 0x204   : > { %v3857_v12 = vmax.f32 %v3851_v17, %v1173_v40 }
 0x206   : > { %2346 = vst.msk [vmem:[#allocation2 + $0x70] sm:$0xff] %vm385_vm1, %v3857_v12  ;;  %1394 = vperm.xlu1 %2952, %v3857_v12  }
 0x207   : > { %v1177_v23 = vpop.xlane.xlu1 %1176 }
 0x208   : > { %v3865_v4 = vmax.f32 %v3859_v9, %v1177_v23 }
 0x20a   : > { %2347 = vst.msk [vmem:[#allocation2 + $0x78] sm:$0xff] %vm385_vm1, %v3865_v4  ;;  %1399 = vperm.xlu0 %2951, %v3865_v4  }
 0x20b   : > { %v1181_v40 = vpop.xlane.xlu0 %1180 }
 0x20c   : > { %v3873_v59 = vmax.f32 %v3867_v1, %v1181_v40 }
 0x20e   : > { %2348 = vst.msk [vmem:[#allocation2 + $0x80] sm:$0xff] %vm385_vm1, %v3873_v59  ;;  %1404 = vperm.xlu1 %2952, %v3873_v59  }
 0x20f   : > { %v1185_v23 = vpop.xlane.xlu1 %1184 }
 0x210   : > { %v3881_v50 = vmax.f32 %v3875_v55, %v1185_v23 }
 0x212   : > { %2349 = vst.msk [vmem:[#allocation2 + $0x88] sm:$0xff] %vm385_vm1, %v3881_v50  ;;  %1409 = vperm.xlu0 %2951, %v3881_v50  }
 0x213   : > { %v1189_v40 = vpop.xlane.xlu0 %1188 }
 0x214   : > { %v3889_v41 = vmax.f32 %v3883_v48, %v1189_v40 }
 0x216   : > { %2350 = vst.msk [vmem:[#allocation2 + $0x90] sm:$0xff] %vm385_vm1, %v3889_v41  ;;  %1414 = vperm.xlu1 %2952, %v3889_v41  }
 0x217   : > { %v1193_v23 = vpop.xlane.xlu1 %1192 }
 0x218   : > { %v3897_v36 = vmax.f32 %v3891_v39, %v1193_v23  ;;  %v4619_v39 = vsub.f32 %v3717_v37, %v3727_v6  ;;  %v4620_v23 = vsub.f32 %v3710_v20, %v3715_v43  ;;  %v3938_v6 = vld [vmem:[#allocation2 + $0xb8] sm:$0xff] }
 0x21a   : > { %4616 = vst [vmem:[#allocation43_spill] sm:$0xff] %v3897_v36  ;;  %2351 = vst.msk [vmem:[#allocation2 + $0x98] sm:$0xff] %vm385_vm1, %v3897_v36  ;;  %1419 = vperm.xlu0 %2951, %v3897_v36   ;;  %v1272_v24 = vmul.f32 1.442695, %v4619_v39 }
 0x21b   : > { %v1197_v40 = vpop.xlane.xlu0 %1196 }
 0x21c   : > { %v3907_v29 = vmax.f32 %v3899_v34, %v1197_v40  ;;  %v3922_v40 = vld [vmem:[#allocation2 + $0xb0] sm:$0xff]  ;;  %2992 = vpow2.f32 %v1272_v24  ;;  %v4622_v24 = vsub.f32 %v3741_v54, %v3751_v7 }
 0x21e   : > { %4618 = vst [vmem:[#allocation45_spill] sm:$0xff] %v3907_v29  ;;  %2352 = vst.msk [vmem:[#allocation2 + $0xa0] sm:$0xff] %vm385_vm1, %v3907_v29  ;;  %1424 = vperm.xlu1 %2952, %v3907_v29   ;;  %v1270_v29 = vmul.f32 1.442695, %v4620_v23  ;;  %v1276_v20 = vmul.f32 1.442695, %v4622_v24  ;;  %v4625_v23 = vsub.f32 %v3765_v28, %v3775_v32  ;;  %v4627_v32 = vsub.f32 %v3787_v0, %v3795_v62 }
 0x21f   : > { %v1201_v31 = vpop.xlane.xlu1 %1200  ;;  %v1256_v0 = vsub.f32 %v3835_v18, %v3841_v30  ;;  %v1259_v18 = vsub.f32 %v3859_v9, %v3865_v4  ;;  %v1262_v9 = vsub.f32 %v3883_v48, %v3889_v41 }
 0x220   : > { %v3920_v36 = vmax.f32 %v3909_v26, %v1201_v31  ;;  %v4621_v31 = vsub.f32 %v3729_v14, %v3739_v42  ;;  %2994 = vpow2.f32 %v1270_v29  ;;  %v4623_v42 = vmov 0.0   ;;  %v4006_v14 = vld [vmem:[#allocation2 + $0xc0] sm:$0xff] }
 0x221   : > { %440 = vst.msk [vmem:[#allocation4 + $0x8] sm:$0xff] %vm438_vm4, %v4623_v42  ;;  %439 = vst.msk [vmem:[#allocation4] sm:$0xff] %vm438_vm4, %v4623_v42  ;;  %v4624_v29 = vsub.f32 %v3753_v33, %v3763_v49  ;;  %v4626_v33 = vsub.f32 %v3777_v58, %v3785_v25  ;;  %v1284_v28 = vmul.f32 1.442695, %v4627_v32  ;;  %v4628_v58 = vsub.f32 %v3797_v16, %v3805_v11 }
 0x222   : > { %2353 = vst.msk [vmem:[#allocation2 + $0xa8] sm:$0xff] %vm385_vm1, %v3920_v36  ;;  %1429 = vperm.xlu0 %2951, %v3920_v36   ;;  %v1274_v39 = vmul.f32 1.442695, %v4621_v31  ;;  %v1280_v31 = vmul.f32 1.442695, %v4625_v23  ;;  %v4629_v11 = vsub.f32 %v3807_v2, %v3815_v60  ;;  %v1257_v60 = vsub.f32 %v3843_v27, %v3849_v22 }
 0x223   : > { %v1205_v34 = vpop.xlane.xlu0 %1204  ;;  %441 = vst.msk [vmem:[#allocation4 + $0x10] sm:$0xff] %vm438_vm4, %v4623_v42  ;;  %442 = vst.msk [vmem:[#allocation4 + $0x18] sm:$0xff] %vm438_vm4, %v4623_v42  ;;  %v1260_v27 = vsub.f32 %v3867_v1, %v3873_v59 }
 0x224   : > { %v3936_v37 = vmax.f32 %v3922_v40, %v1205_v34  ;;  %443 = vst.msk [vmem:[#allocation4 + $0x20] sm:$0xff] %vm438_vm4, %v4623_v42  ;;  %444 = vst.msk [vmem:[#allocation4 + $0x28] sm:$0xff] %vm438_vm4, %v4623_v42  ;;  %2996 = vpow2.f32 %v1274_v39  ;;  %v1278_v34 = vmul.f32 1.442695, %v4624_v29  ;;  %v1282_v39 = vmul.f32 1.442695, %v4626_v33 }
 0x225   : > { %445 = vst.msk [vmem:[#allocation4 + $0x30] sm:$0xff] %vm438_vm4, %v4623_v42  ;;  %446 = vst.msk [vmem:[#allocation4 + $0x38] sm:$0xff] %vm438_vm4, %v4623_v42  ;;  %2998 = vpow2.f32 %v1276_v20  ;;  %v1286_v20 = vmul.f32 1.442695, %v4628_v58  ;;  %v1254_v29 = vsub.f32 %v3817_v52, %v3825_v45  ;;  %v1288_v45 = vmul.f32 1.442695, %v4629_v11 }
 0x226   : > { %v1266_v21 = vsub.f32 %v3922_v40, %v3936_v37  ;;  %2354 = vst.msk [vmem:[#allocation2 + $0xb0] sm:$0xff] %vm385_vm1, %v3936_v37  ;;  %1434 = vperm.xlu1 %2952, %v3936_v37   ;;  %3000 = vpow2.f32 %v1278_v34  ;;  %v1255_v52 = vsub.f32 %v3827_v38, %v3833_v35  ;;  %v1294_v35 = vmul.f32 1.442695, %v1256_v0 }
 0x227   : > { %v1209_v43 = vpop.xlane.xlu1 %1208  ;;  %447 = vst.msk [vmem:[#allocation4 + $0x40] sm:$0xff] %vm438_vm4, %v4623_v42  ;;  %448 = vst.msk [vmem:[#allocation4 + $0x48] sm:$0xff] %vm438_vm4, %v4623_v42  ;;  %3002 = vpow2.f32 %v1280_v31  ;;  %v1290_v62 = vmul.f32 1.442695, %v1254_v29  ;;  %v1258_v38 = vsub.f32 %v3851_v17, %v3857_v12  ;;  %v1296_v30 = vmul.f32 1.442695, %v1257_v60 }
 0x228   : > { %449 = vst.msk [vmem:[#allocation4 + $0x50] sm:$0xff] %vm438_vm4, %v4623_v42  ;;  %450 = vst.msk [vmem:[#allocation4 + $0x58] sm:$0xff] %vm438_vm4, %v4623_v42  ;;  %v4004_v7 = vmax.f32 %v3938_v6, %v1209_v43  ;;  %v4022_v43 = vld [vmem:[#allocation2 + $0xc8] sm:$0xff]  ;;  %3004 = vpow2.f32 %v1282_v39  ;;  %v1292_v33 = vmul.f32 1.442695, %v1255_v52  ;;  %v1261_v17 = vsub.f32 %v3875_v55, %v3881_v50 }
 0x229   : > { %451 = vst.msk [vmem:[#allocation4 + $0x60] sm:$0xff] %vm438_vm4, %v4623_v42  ;;  %452 = vst.msk [vmem:[#allocation4 + $0x68] sm:$0xff] %vm438_vm4, %v4623_v42  ;;  %v4040_v23 = vpop.eup %2992  ;;  %3006 = vpow2.f32 %v1284_v28  ;;  %v1298_v22 = vmul.f32 1.442695, %v1258_v38  ;;  %v1300_v12 = vmul.f32 1.442695, %v1259_v18 }
 0x22a   : > { %453 = vst.msk [vmem:[#allocation4 + $0x70] sm:$0xff] %vm438_vm4, %v4623_v42  ;;  %454 = vst.msk [vmem:[#allocation4 + $0x78] sm:$0xff] %vm438_vm4, %v4623_v42  ;;  %v1267_v54 = vsub.f32 %v3938_v6, %v4004_v7  ;;  %1439 = vperm.xlu0 %2951, %v4004_v7   ;;  %3008 = vpow2.f32 %v1286_v20  ;;  %v1302_v4 = vmul.f32 1.442695, %v1260_v27  ;;  %v1304_v59 = vmul.f32 1.442695, %v1261_v17 }
 0x22b   : > { %455 = vst.msk [vmem:[#allocation4 + $0x80] sm:$0xff] %vm438_vm4, %v4623_v42  ;;  %456 = vst.msk [vmem:[#allocation4 + $0x88] sm:$0xff] %vm438_vm4, %v4623_v42  ;;  %v1213_v49 = vpop.xlane.xlu0 %1212  ;;  %3010 = vpow2.f32 %v1288_v45  ;;  %v1306_v20 = vmul.f32 1.442695, %v1262_v9 }
 0x22c   : > { %457 = vst.msk [vmem:[#allocation4 + $0x90] sm:$0xff] %vm438_vm4, %v4623_v42  ;;  %458 = vst.msk [vmem:[#allocation4 + $0x98] sm:$0xff] %vm438_vm4, %v4623_v42  ;;  %v4020_v24 = vmax.f32 %v4006_v14, %v1213_v49  ;;  %3012 = vpow2.f32 %v1290_v62  ;;  %v1316_v40 = vmul.f32 1.442695, %v1267_v54 }
 0x22d   : > { %459 = vst.msk [vmem:[#allocation4 + $0xa0] sm:$0xff] %vm438_vm4, %v4623_v42  ;;  %460 = vst.msk [vmem:[#allocation4 + $0xa8] sm:$0xff] %vm438_vm4, %v4623_v42  ;;  %v4053_v16 = vpop.eup %2994  ;;  %3014 = vpow2.f32 %v1292_v33 }
 0x22e   : > { %461 = vst.msk [vmem:[#allocation4 + $0xb0] sm:$0xff] %vm438_vm4, %v4623_v42  ;;  %462 = vst.msk [vmem:[#allocation4 + $0xb8] sm:$0xff] %vm438_vm4, %v4623_v42  ;;  %1444 = vperm.xlu1 %2952, %v4020_v24   ;;  %3016 = vpow2.f32 %v1294_v35 }
 0x22f   : > { %463 = vst.msk [vmem:[#allocation4 + $0xc0] sm:$0xff] %vm438_vm4, %v4623_v42  ;;  %464 = vst.msk [vmem:[#allocation4 + $0xc8] sm:$0xff] %vm438_vm4, %v4623_v42  ;;  %v1268_v42 = vsub.f32 %v4006_v14, %v4020_v24  ;;  %v1217_v25 = vpop.xlane.xlu1 %1216  ;;  %3018 = vpow2.f32 %v1296_v30 }
 0x230   : > { %2355 = vst.msk [vmem:[#allocation2 + $0xb8] sm:$0xff] %vm385_vm1, %v4004_v7  ;;  %2356 = vst.msk [vmem:[#allocation2 + $0xc0] sm:$0xff] %vm385_vm1, %v4020_v24  ;;  %v4038_v34 = vmax.f32 %v4022_v43, %v1217_v25  ;;  %3020 = vpow2.f32 %v1298_v22 }
 0x231   : > { %v4057_v49 = vpop.eup %2996  ;;  %3022 = vpow2.f32 %v1300_v12 }
 0x232   : > { %v1269_v31 = vsub.f32 %v4022_v43, %v4038_v34  ;;  %2357 = vst.msk [vmem:[#allocation2 + $0xc8] sm:$0xff] %vm385_vm1, %v4038_v34  ;;  %1850 = vperm.xlu1 %2952, %v4040_v23   ;;  %1449 = vperm.xlu0 %2951, %v4038_v34   ;;  %v4063_v2 = vpop.eup %2998  ;;  %3024 = vpow2.f32 %v1302_v4 }
 0x233   : > { %v4067_v39 = vpop.eup %3000  ;;  %3026 = vpow2.f32 %v1304_v59 }
 0x234   : > { %v4073_v32 = vpop.eup %3002  ;;  %3028 = vpow2.f32 %v1306_v20 }
 0x235   : > { %v4077_v28 = vpop.eup %3004 }
 0x236   : > { %1855 = vperm.xlu1 %2952, %v4057_v49   ;;  %1845 = vperm.xlu0 %2951, %v4053_v16   ;;  %v4083_v25 = vpop.eup %3006 }
 0x237   : > { %v4087_v58 = vpop.eup %3008 }
 0x238   : > { %v4091_v1 = vpop.eup %3010 }
 0x239   : > { %v4093_v50 = vpop.eup %3012 }
 0x23a   : > { %1865 = vperm.xlu1 %2952, %v4067_v39   ;;  %1860 = vperm.xlu0 %2951, %v4063_v2   ;;  %v4097_v41 = vpop.eup %3014 }
 0x23b   : > { %v4099_v48 = vpop.eup %3016 }
 0x23c   : > { %v4105_v45 = vpop.eup %3018 }
 0x23d   : > { %v4107_v62 = vpop.eup %3020 }
 0x23e   : > { %1875 = vperm.xlu1 %2952, %v4077_v28   ;;  %1870 = vperm.xlu0 %2951, %v4073_v32  }
 0x242   : > { %1885 = vperm.xlu1 %2952, %v4087_v58   ;;  %1880 = vperm.xlu0 %2951, %v4083_v25  }
 0x246   : > { %1895 = vperm.xlu1 %2952, %v4093_v50   ;;  %1890 = vperm.xlu0 %2951, %v4091_v1  }
 0x249   : > { %v1325_v55 = vpop.permute.xlu0 %1324 }
 0x24a   : > { %v1452_v29 = vsub.f32 %v3404_v44, %v1325_v55  ;;  %v1453_v11 = vsub.f32 %v3409_v46, %v1325_v55  ;;  %1905 = vperm.xlu1 %2952, %v4099_v48   ;;  %1900 = vperm.xlu0 %2951, %v4097_v41   ;;  %v4113_v44 = vpop.eup %3022 }
 0x24b   : > { %v4115_v30 = vpop.eup %3024 }
 0x24c   : > { %v1504_v52 = vmul.f32 1.442695, %v1452_v29  ;;  %v1506_v0 = vmul.f32 1.442695, %v1453_v11 }
 0x24d   : > { %v1330_v33 = vpop.permute.xlu1 %1329 }
 0x24e   : > { %v1454_v60 = vsub.f32 %v3411_v47, %v1330_v33  ;;  %v1455_v35 = vsub.f32 %v3418_v51, %v1330_v33  ;;  %1915 = vperm.xlu1 %2952, %v4107_v62   ;;  %1910 = vperm.xlu0 %2951, %v4105_v45   ;;  %3030 = vpow2.f32 %v1504_v52  ;;  %v4121_v51 = vpop.eup %3026 }
 0x24f   : > { %3032 = vpow2.f32 %v1506_v0  ;;  %v4123_v12 = vpop.eup %3028 }
 0x250   : > { %v1508_v46 = vmul.f32 1.442695, %v1454_v60  ;;  %v1510_v38 = vmul.f32 1.442695, %v1455_v35 }
 0x251   : > { %v1335_v18 = vpop.permute.xlu1 %1334 }
 0x252   : > { %3034 = vpow2.f32 %v1508_v46  ;;  %v1456_v22 = vsub.f32 %v3422_v53, %v1335_v18  ;;  %v1457_v47 = vsub.f32 %v3427_v56, %v1335_v18  ;;  %1925 = vperm.xlu1 %2952, %v4115_v30   ;;  %1920 = vperm.xlu0 %2951, %v4113_v44  }
 0x253   : > { %3036 = vpow2.f32 %v1510_v38 }
 0x254   : > { %v1512_v27 = vmul.f32 1.442695, %v1456_v22  ;;  %v1514_v17 = vmul.f32 1.442695, %v1457_v47 }
 0x255   : > { %v1340_v4 = vpop.permute.xlu1 %1339 }
 0x256   : > { %v1458_v9 = vsub.f32 %v3429_v57, %v1340_v4  ;;  %v1459_v59 = vsub.f32 %v3436_v61, %v1340_v4  ;;  %1935 = vperm.xlu1 %2952, %v4123_v12   ;;  %1930 = vperm.xlu0 %2951, %v4121_v51   ;;  %3038 = vpow2.f32 %v1512_v27 }
 0x257   : > { %3040 = vpow2.f32 %v1514_v17 }
 0x258   : > { %v1516_v53 = vmul.f32 1.442695, %v1458_v9  ;;  %v1518_v56 = vmul.f32 1.442695, %v1459_v59 }
 0x259   : > { %v1345_v20 = vpop.permute.xlu1 %1344 }
 0x25a   : > { %3042 = vpow2.f32 %v1516_v53  ;;  %v1460_v55 = vsub.f32 %v3440_v63, %v1345_v20  ;;  %v1461_v29 = vsub.f32 %v3445_v3, %v1345_v20 }
 0x25b   : > { %3044 = vpow2.f32 %v1518_v56  ;;  %v4131_v52 = vpop.eup %3030 }
 0x25c   : > { %v1520_v11 = vmul.f32 1.442695, %v1460_v55  ;;  %v1522_v57 = vmul.f32 1.442695, %v1461_v29  ;;  %v4133_v0 = vpop.eup %3032 }
 0x25d   : > { %v1350_v61 = vpop.permute.xlu1 %1349 }
 0x25e   : > { %v1462_v33 = vsub.f32 %v3449_v5, %v1350_v61  ;;  %v1463_v60 = vsub.f32 %v3454_v8, %v1350_v61  ;;  %3046 = vpow2.f32 %v1520_v11 }
 0x25f   : > { %v3035_v35 = vpop.eup %3034  ;;  %3048 = vpow2.f32 %v1522_v57  ;;  %v4630_v57 = vld [vmem:[#allocation6_spill] sm:$0xff] }
 0x260   : > { %v3037_v46 = vpop.eup %3036  ;;  %v1524_v38 = vmul.f32 1.442695, %v1462_v33  ;;  %v1526_v18 = vmul.f32 1.442695, %v1463_v60  ;;  %v1999_v63 = vpack.c.bf16 %v3035_v35, %v4131_v52  ;;  %v4631_v33 = vld [vmem:[#allocation7_spill] sm:$0xff] }
 0x261   : > { %v1355_v3 = vpop.permute.xlu1 %1354  ;;  %v2000_v22 = vpack.c.bf16 %v3037_v46, %v4133_v0 }
 0x262   : > { %3050 = vpow2.f32 %v1524_v38  ;;  %v1464_v47 = vsub.f32 %v3458_v10, %v1355_v3  ;;  %v1465_v27 = vsub.f32 %v3463_v13, %v1355_v3  ;;  %v4632_v3 = vld [vmem:[#allocation8_spill] sm:$0xff] }
 0x263   : > { %3052 = vpow2.f32 %v1526_v18  ;;  %2907 = vmatprep.mubr.msk.bf16.mxu1 %vm1113_vm3, %v2000_v22  ;;  %v3039_v8 = vpop.eup %3038 }
 0x264   : > { %v1528_v5 = vmul.f32 1.442695, %v1464_v47  ;;  %2175 = vmatmul.mubr.bf16.vlgmr.msra.gmra.mxu1 %v1999_v63  ;;  %v1530_v17 = vmul.f32 1.442695, %v1465_v27  ;;  %v3041_v9 = vpop.eup %3040  ;;  %v4633_v47 = vld [vmem:[#allocation9_spill] sm:$0xff] }
 0x265   : > { %v1360_v4 = vpop.permute.xlu1 %1359 }
 0x266   : > { %v1466_v59 = vsub.f32 %v3467_v15, %v1360_v4  ;;  %v1467_v53 = vsub.f32 %v3524_v19, %v1360_v4  ;;  %3054 = vpow2.f32 %v1528_v5 }
 0x267   : > { %v4144_v56 = vpop.eup %3042  ;;  %3056 = vpow2.f32 %v1530_v17  ;;  %v1664_v17 = vsel %vm1113_vm3, %v3037_v46, 0.0 }
 0x268   : > { %v3045_v20 = vpop.eup %3044  ;;  %v1532_v10 = vmul.f32 1.442695, %v1466_v59  ;;  %v1534_v55 = vmul.f32 1.442695, %v1467_v53  ;;  %v2001_v13 = vpack.c.bf16 %v4144_v56, %v3039_v8 }
 0x269   : > { %v1365_v29 = vpop.permute.xlu1 %1364  ;;  %v2002_v11 = vpack.c.bf16 %v3045_v20, %v3041_v9 }
 0x26a   : > { %3058 = vpow2.f32 %v1532_v10  ;;  %v1468_v61 = vsub.f32 %v4630_v57, %v1365_v29  ;;  %v1469_v60 = vsub.f32 %v4631_v33, %v1365_v29  ;;  %v4634_v29 = vld [vmem:[#allocation10_spill] sm:$0xff]  ;;  %v4635_v57 = vld [vmem:[#allocation11_spill] sm:$0xff]  ;;  %v1665_v33 = vadd.f32 %v3035_v35, %v1664_v17 }
 0x26b   : > { %3060 = vpow2.f32 %v1534_v55  ;;  %2908 = vmatprep.mubr.msk.bf16.mxu1 %vm1113_vm3, %v2002_v11  ;;  %v3047_v19 = vpop.eup %3046 }
 0x26c   : > { %v1538_v15 = vmul.f32 1.442695, %v1469_v60  ;;  %2183 = vmatmul.mubr.bf16.gmra.mxu1 %v2001_v13  ;;  %v1536_v38 = vmul.f32 1.442695, %v1468_v61  ;;  %v3049_v63 = vpop.eup %3048 }
 0x26d   : > { %v1370_v18 = vpop.permute.xlu0 %1369 }
 0x26e   : > { %v1470_v22 = vsub.f32 %v4632_v3, %v1370_v18  ;;  %v1471_v27 = vsub.f32 %v4633_v47, %v1370_v18  ;;  %3062 = vpow2.f32 %v1538_v15  ;;  %v1668_v15 = vsel %vm1113_vm3, %v3041_v9, 0.0  ;;  %v4636_v47 = vld [vmem:[#allocation12_spill] sm:$0xff] }
 0x26f   : > { %v4152_v5 = vpop.eup %3050  ;;  %3064 = vpow2.f32 %v1536_v38  ;;  %v1660_v18 = vsel %vm1113_vm3, %v4133_v0, 0.0  ;;  %v1669_v35 = vadd.f32 %v3039_v8, %v1668_v15 }
 0x270   : > { %v3053_v4 = vpop.eup %3052  ;;  %v1540_v59 = vmul.f32 1.442695, %v1470_v22  ;;  %v1542_v53 = vmul.f32 1.442695, %v1471_v27  ;;  %v2003_v10 = vpack.c.bf16 %v4152_v5, %v3047_v19  ;;  %v1661_v17 = vadd.f32 %v4131_v52, %v1660_v18 }
 0x271   : > { %v1375_v55 = vpop.permute.xlu1 %1374  ;;  %v2004_v13 = vpack.c.bf16 %v3053_v4, %v3049_v63  ;;  %v1680_v15 = vsel %vm1113_vm3, %v3053_v4, 0.0 }
 0x272   : > { %3066 = vpow2.f32 %v1540_v59  ;;  %v1472_v11 = vsub.f32 %v4634_v29, %v1375_v55  ;;  %v1473_v61 = vsub.f32 %v4635_v57, %v1375_v55  ;;  %v4637_v59 = vld [vmem:[#allocation13_spill] sm:$0xff] }
 0x273   : > { %3068 = vpow2.f32 %v1542_v53  ;;  %2909 = vmatprep.mubr.msk.bf16.mxu1 %vm1113_vm3, %v2004_v13  ;;  %v3055_v38 = vpop.eup %3054 }
 0x274   : > { %v1544_v60 = vmul.f32 1.442695, %v1472_v11  ;;  %v1546_v46 = vmul.f32 1.442695, %v1473_v61  ;;  %2191 = vmatmul.mubr.bf16.gmra.mxu1 %v2003_v10  ;;  %v3057_v22 = vpop.eup %3056  ;;  %v1672_v10 = vsel %vm1113_vm3, %v3045_v20, 0.0  ;;  %v1676_v11 = vsel %vm1113_vm3, %v3049_v63, 0.0 }
 0x275   : > { %v1380_v3 = vpop.permute.xlu0 %1379  ;;  %1666 = vadd.xlane.f32.xlu0 %v1665_v33  ;;  %v4638_v33 = vld [vmem:[#allocation14_spill] sm:$0xff]  ;;  %v1677_v52 = vadd.f32 %v3047_v19, %v1676_v11  ;;  %v1673_v8 = vadd.f32 %v4144_v56, %v1672_v10  ;;  %v1684_v63 = vsel %vm1113_vm3, %v3057_v22, 0.0  ;;  %v1681_v10 = vadd.f32 %v4152_v5, %v1680_v15 }
 0x276   : > { %3070 = vpow2.f32 %v1544_v60  ;;  %v1474_v27 = vsub.f32 %v4636_v47, %v1380_v3  ;;  %v1475_v53 = vsub.f32 %v4637_v59, %v1380_v3  ;;  %v4639_v3 = vld [vmem:[#allocation15_spill] sm:$0xff]  ;;  %v1685_v56 = vadd.f32 %v3055_v38, %v1684_v63 }
 0x277   : > { %v3059_v55 = vpop.eup %3058  ;;  %3072 = vpow2.f32 %v1546_v46 }
 0x278   : > { %v3061_v9 = vpop.eup %3060  ;;  %v1548_v13 = vmul.f32 1.442695, %v1474_v27  ;;  %v1550_v29 = vmul.f32 1.442695, %v1475_v53  ;;  %v2005_v0 = vpack.c.bf16 %v3059_v55, %v3055_v38  ;;  %v4640_v53 = vld [vmem:[#allocation16_spill] sm:$0xff] }
 0x279   : > { %1670 = vadd.xlane.f32.xlu0 %v1669_v35  ;;  %v1385_v57 = vpop.permute.xlu1 %1384  ;;  %v2006_v61 = vpack.c.bf16 %v3061_v9, %v3057_v22 }
 0x27a   : > { %3074 = vpow2.f32 %v1548_v13  ;;  %v1476_v60 = vsub.f32 %v4638_v33, %v1385_v57  ;;  %v1477_v47 = vsub.f32 %v4639_v3, %v1385_v57  ;;  %1662 = vadd.xlane.f32.xlu1 %v1661_v17  ;;  %v4641_v17 = vld [vmem:[#allocation17_spill] sm:$0xff]  ;;  %v1688_v33 = vsel %vm1113_vm3, %v3061_v9, 0.0 }
 0x27b   : > { %3076 = vpow2.f32 %v1550_v29  ;;  %2910 = vmatprep.mubr.msk.bf16.mxu1 %vm1113_vm3, %v2006_v61  ;;  %v3063_v18 = vpop.eup %3062  ;;  %v1689_v63 = vadd.f32 %v3059_v55, %v1688_v33  ;;  %v4647_v33 = vld [vmem:[#allocation23_spill] sm:$0xff] }
 0x27c   : > { %v1552_v20 = vmul.f32 1.442695, %v1476_v60  ;;  %v1554_v46 = vmul.f32 1.442695, %v1477_v47  ;;  %2199 = vmatmul.mubr.bf16.gmra.mxu1 %v2005_v0  ;;  %v3065_v59 = vpop.eup %3064  ;;  %v1692_v4 = vsel %vm1113_vm3, %v3063_v18, 0.0  ;;  %v4642_v60 = vld [vmem:[#allocation18_spill] sm:$0xff] }
 0x27d   : > { %v1390_v27 = vpop.permute.xlu0 %1389  ;;  %1678 = vadd.xlane.f32.xlu0 %v1677_v52  ;;  %v4643_v47 = vld [vmem:[#allocation19_spill] sm:$0xff]  ;;  %v1693_v5 = vadd.f32 %v3065_v59, %v1692_v4 }
 0x27e   : > { %3078 = vpow2.f32 %v1552_v20  ;;  %v1478_v35 = vsub.f32 %v4640_v53, %v1390_v27  ;;  %v1479_v13 = vsub.f32 %v4641_v17, %v1390_v27  ;;  %1674 = vadd.xlane.f32.xlu1 %v1673_v8  ;;  %v4644_v27 = vld [vmem:[#allocation20_spill] sm:$0xff] }
 0x27f   : > { %v3067_v19 = vpop.eup %3066  ;;  %3080 = vpow2.f32 %v1554_v46 }
 0x280   : > { %v3069_v29 = vpop.eup %3068  ;;  %v1556_v0 = vmul.f32 1.442695, %v1478_v35  ;;  %v1558_v22 = vmul.f32 1.442695, %v1479_v13  ;;  %v2007_v11 = vpack.c.bf16 %v3067_v19, %v3065_v59  ;;  %v4645_v35 = vld [vmem:[#allocation21_spill] sm:$0xff] }
 0x281   : > { %1686 = vadd.xlane.f32.xlu0 %v1685_v56  ;;  %v1395_v57 = vpop.permute.xlu1 %1394  ;;  %v2008_v61 = vpack.c.bf16 %v3069_v29, %v3063_v18  ;;  %v1696_v18 = vsel %vm1113_vm3, %v3069_v29, 0.0  ;;  %v4646_v29 = vld [vmem:[#allocation22_spill] sm:$0xff] }
 0x282   : > { %3082 = vpow2.f32 %v1556_v0  ;;  %v1480_v3 = vsub.f32 %v4642_v60, %v1395_v57  ;;  %v1481_v52 = vsub.f32 %v4643_v47, %v1395_v57  ;;  %1682 = vadd.xlane.f32.xlu1 %v1681_v10 }
 0x283   : > { %v3071_v38 = vpop.eup %3070  ;;  %3084 = vpow2.f32 %v1558_v22  ;;  %2911 = vmatprep.mubr.msk.bf16.mxu1 %vm1113_vm3, %v2008_v61  ;;  %v1697_v22 = vadd.f32 %v3067_v19, %v1696_v18 }
 0x284   : > { %v3073_v8 = vpop.eup %3072  ;;  %v1560_v20 = vmul.f32 1.442695, %v1480_v3  ;;  %v1562_v46 = vmul.f32 1.442695, %v1481_v52  ;;  %2207 = vmatmul.mubr.bf16.gmra.mxu1 %v2007_v11 }
 0x285   : > { %v1400_v15 = vpop.permute.xlu0 %1399  ;;  %1694 = vadd.xlane.f32.xlu0 %v1693_v5  ;;  %v1700_v9 = vsel %vm1113_vm3, %v3073_v8, 0.0 }
 0x286   : > { %3086 = vpow2.f32 %v1560_v20  ;;  %v1482_v53 = vsub.f32 %v4644_v27, %v1400_v15  ;;  %v1483_v17 = vsub.f32 %v4645_v35, %v1400_v15  ;;  %1690 = vadd.xlane.f32.xlu1 %v1689_v63  ;;  %v1701_v59 = vadd.f32 %v3071_v38, %v1700_v9  ;;  %v4648_v20 = vld [vmem:[#allocation24_spill] sm:$0xff]  ;;  %v4649_v63 = vld [vmem:[#allocation25_spill] sm:$0xff] }
 0x287   : > { %v3075_v13 = vpop.eup %3074  ;;  %3088 = vpow2.f32 %v1562_v46 }
 0x288   : > { %v3077_v56 = vpop.eup %3076  ;;  %v1564_v10 = vmul.f32 1.442695, %v1482_v53  ;;  %v1566_v0 = vmul.f32 1.442695, %v1483_v17  ;;  %v2009_v55 = vpack.c.bf16 %v3075_v13, %v3071_v38 }
 0x289   : > { %1702 = vadd.xlane.f32.xlu0 %v1701_v59  ;;  %v1405_v11 = vpop.permute.xlu1 %1404  ;;  %v2010_v4 = vpack.c.bf16 %v3077_v56, %v3073_v8  ;;  %v1704_v57 = vsel %vm1113_vm3, %v3077_v56, 0.0 }
 0x28a   : > { %3090 = vpow2.f32 %v1564_v10  ;;  %v1484_v61 = vsub.f32 %v4646_v29, %v1405_v11  ;;  %v1485_v60 = vsub.f32 %v4647_v33, %v1405_v11  ;;  %1698 = vadd.xlane.f32.xlu1 %v1697_v22  ;;  %v1705_v19 = vadd.f32 %v3075_v13, %v1704_v57  ;;  %v4650_v10 = vld [vmem:[#allocation26_spill] sm:$0xff]  ;;  %v4651_v22 = vld [vmem:[#allocation27_spill] sm:$0xff] }
 0x28b   : > { %v3079_v3 = vpop.eup %3078  ;;  %3092 = vpow2.f32 %v1566_v0  ;;  %2912 = vmatprep.mubr.msk.bf16.mxu1 %vm1113_vm3, %v2010_v4 }
 0x28c   : > { %v3081_v47 = vpop.eup %3080  ;;  %v1568_v52 = vmul.f32 1.442695, %v1484_v61  ;;  %v1570_v5 = vmul.f32 1.442695, %v1485_v60  ;;  %2215 = vmatmul.mubr.bf16.gmra.mxu1 %v2009_v55 }
 0x28d   : > { %v1410_v38 = vpop.permute.xlu0 %1409  ;;  %v1708_v8 = vsel %vm1113_vm3, %v3081_v47, 0.0 }
 0x28e   : > { %3094 = vpow2.f32 %v1568_v52  ;;  %v1486_v46 = vsub.f32 %v4648_v20, %v1410_v38  ;;  %v1487_v15 = vsub.f32 %v4649_v63, %v1410_v38  ;;  %1706 = vadd.xlane.f32.xlu1 %v1705_v19  ;;  %v1709_v9 = vadd.f32 %v3079_v3, %v1708_v8  ;;  %v4653_v52 = vld [vmem:[#allocation29_spill] sm:$0xff] }
 0x28f   : > { %v3083_v18 = vpop.eup %3082  ;;  %3096 = vpow2.f32 %v1570_v5 }
 0x290   : > { %v3085_v27 = vpop.eup %3084  ;;  %v1572_v53 = vmul.f32 1.442695, %v1486_v46  ;;  %v1574_v35 = vmul.f32 1.442695, %v1487_v15  ;;  %1710 = vadd.xlane.f32.xlu0 %v1709_v9  ;;  %v2011_v17 = vpack.c.bf16 %v3083_v18, %v3079_v3  ;;  %v4652_v3 = vld [vmem:[#allocation28_spill] sm:$0xff] }
 0x291   : > { %v1415_v59 = vpop.permute.xlu1 %1414  ;;  %v2012_v56 = vpack.c.bf16 %v3085_v27, %v3081_v47  ;;  %v1712_v13 = vsel %vm1113_vm3, %v3085_v27, 0.0  ;;  %v4654_v27 = vld [vmem:[#allocation30_spill] sm:$0xff] }
 0x292   : > { %3098 = vpow2.f32 %v1572_v53  ;;  %v1488_v0 = vsub.f32 %v4650_v10, %v1415_v59  ;;  %v1489_v55 = vsub.f32 %v4651_v22, %v1415_v59  ;;  %v1713_v11 = vadd.f32 %v3083_v18, %v1712_v13 }
 0x293   : > { %v3087_v4 = vpop.eup %3086  ;;  %3100 = vpow2.f32 %v1574_v35  ;;  %2913 = vmatprep.mubr.msk.bf16.mxu1 %vm1113_vm3, %v2012_v56  ;;  %v4655_v35 = vld [vmem:[#allocation31_spill] sm:$0xff] }
 0x294   : > { %v3089_v57 = vpop.eup %3088  ;;  %v1576_v29 = vmul.f32 1.442695, %v1488_v0  ;;  %v1578_v61 = vmul.f32 1.442695, %v1489_v55  ;;  %1714 = vadd.xlane.f32.xlu1 %v1713_v11  ;;  %2223 = vmatmul.mubr.bf16.gmra.mxu1 %v2011_v17  ;;  %v4656_v11 = vld [vmem:[#allocation32_spill] sm:$0xff] }
 0x295   : > { %v1420_v33 = vpop.permute.xlu0 %1419  ;;  %v1716_v60 = vsel %vm1113_vm3, %v3089_v57, 0.0 }
 0x296   : > { %3102 = vpow2.f32 %v1576_v29  ;;  %v1490_v47 = vsub.f32 %v4652_v3, %v1420_v33  ;;  %v1491_v5 = vsub.f32 %v4653_v52, %v1420_v33  ;;  %v1717_v19 = vadd.f32 %v3087_v4, %v1716_v60 }
 0x297   : > { %v3091_v38 = vpop.eup %3090  ;;  %3104 = vpow2.f32 %v1578_v61 }
 0x298   : > { %v3093_v8 = vpop.eup %3092  ;;  %v1580_v20 = vmul.f32 1.442695, %v1490_v47  ;;  %v1582_v46 = vmul.f32 1.442695, %v1491_v5  ;;  %1718 = vadd.xlane.f32.xlu0 %v1717_v19  ;;  %v2013_v63 = vpack.c.bf16 %v3091_v38, %v3087_v4 }
 0x299   : > { %v1425_v15 = vpop.permute.xlu1 %1424  ;;  %v2014_v9 = vpack.c.bf16 %v3093_v8, %v3089_v57  ;;  %v1720_v18 = vsel %vm1113_vm3, %v3093_v8, 0.0  ;;  %v4657_v57 = vld [vmem:[#allocation33_spill] sm:$0xff]  ;;  %v4658_v8 = vld [vmem:[#allocation34_spill] sm:$0xff] }
 0x29a   : > { %3106 = vpow2.f32 %v1580_v20  ;;  %v1492_v53 = vsub.f32 %v4654_v27, %v1425_v15  ;;  %v1493_v17 = vsub.f32 %v4655_v35, %v1425_v15  ;;  %v1721_v59 = vadd.f32 %v3091_v38, %v1720_v18 }
 0x29b   : > { %v3095_v56 = vpop.eup %3094  ;;  %3108 = vpow2.f32 %v1582_v46  ;;  %2914 = vmatprep.mubr.msk.bf16.mxu1 %vm1113_vm3, %v2014_v9  ;;  %v4659_v46 = vld [vmem:[#allocation35_spill] sm:$0xff] }
 0x29c   : > { %v3097_v13 = vpop.eup %3096  ;;  %v1584_v10 = vmul.f32 1.442695, %v1492_v53  ;;  %v1586_v0 = vmul.f32 1.442695, %v1493_v17  ;;  %1722 = vadd.xlane.f32.xlu1 %v1721_v59  ;;  %2231 = vmatmul.mubr.bf16.gmra.mxu1 %v2013_v63  ;;  %v4660_v59 = vld [vmem:[#allocation36_spill] sm:$0xff] }
 0x29d   : > { %v1430_v22 = vpop.permute.xlu0 %1429  ;;  %v1724_v55 = vsel %vm1113_vm3, %v3097_v13, 0.0 }
 0x29e   : > { %3110 = vpow2.f32 %v1584_v10  ;;  %v1494_v4 = vsub.f32 %v4656_v11, %v1430_v22  ;;  %v1495_v29 = vsub.f32 %v4657_v57, %v1430_v22  ;;  %v1725_v61 = vadd.f32 %v3095_v56, %v1724_v55 }
 0x29f   : > { %v3099_v33 = vpop.eup %3098  ;;  %3112 = vpow2.f32 %v1586_v0 }
 0x2a0   : > { %v3101_v60 = vpop.eup %3100  ;;  %v1588_v3 = vmul.f32 1.442695, %v1494_v4  ;;  %v1590_v47 = vmul.f32 1.442695, %v1495_v29  ;;  %1726 = vadd.xlane.f32.xlu0 %v1725_v61  ;;  %v2015_v52 = vpack.c.bf16 %v3099_v33, %v3095_v56 }
 0x2a1   : > { %v1435_v5 = vpop.permute.xlu1 %1434  ;;  %v2016_v19 = vpack.c.bf16 %v3101_v60, %v3097_v13  ;;  %v1728_v38 = vsel %vm1113_vm3, %v3101_v60, 0.0  ;;  %v4661_v13 = vld [vmem:[#allocation37_spill] sm:$0xff]  ;;  %v4662_v60 = vld [vmem:[#allocation38_spill] sm:$0xff] }
 0x2a2   : > { %3114 = vpow2.f32 %v1588_v3  ;;  %v1496_v20 = vsub.f32 %v4658_v8, %v1435_v5  ;;  %v1497_v63 = vsub.f32 %v4659_v46, %v1435_v5  ;;  %v1729_v15 = vadd.f32 %v3099_v33, %v1728_v38 }
 0x2a3   : > { %v3103_v9 = vpop.eup %3102  ;;  %3116 = vpow2.f32 %v1590_v47  ;;  %2915 = vmatprep.mubr.msk.bf16.mxu1 %vm1113_vm3, %v2016_v19  ;;  %v4663_v47 = vld [vmem:[#allocation39_spill] sm:$0xff] }
 0x2a4   : > { %v3105_v18 = vpop.eup %3104  ;;  %v1592_v27 = vmul.f32 1.442695, %v1496_v20  ;;  %v1594_v53 = vmul.f32 1.442695, %v1497_v63  ;;  %1730 = vadd.xlane.f32.xlu1 %v1729_v15  ;;  %2239 = vmatmul.mubr.bf16.gmra.mxu1 %v2015_v52  ;;  %v4664_v15 = vld [vmem:[#allocation40_spill] sm:$0xff] }
 0x2a5   : > { %v1440_v35 = vpop.permute.xlu0 %1439  ;;  %v1732_v17 = vsel %vm1113_vm3, %v3105_v18, 0.0 }
 0x2a6   : > { %3118 = vpow2.f32 %v1592_v27  ;;  %v1498_v56 = vsub.f32 %v4660_v59, %v1440_v35  ;;  %v1499_v10 = vsub.f32 %v4661_v13, %v1440_v35  ;;  %v1733_v0 = vadd.f32 %v3103_v9, %v1732_v17 }
 0x2a7   : > { %v3107_v22 = vpop.eup %3106  ;;  %3120 = vpow2.f32 %v1594_v53 }
 0x2a8   : > { %v3109_v55 = vpop.eup %3108  ;;  %v1596_v11 = vmul.f32 1.442695, %v1498_v56  ;;  %v1598_v4 = vmul.f32 1.442695, %v1499_v10  ;;  %1734 = vadd.xlane.f32.xlu0 %v1733_v0  ;;  %v2017_v57 = vpack.c.bf16 %v3107_v22, %v3103_v9 }
 0x2a9   : > { %v1445_v29 = vpop.permute.xlu1 %1444  ;;  %v2018_v61 = vpack.c.bf16 %v3109_v55, %v3105_v18  ;;  %v1736_v33 = vsel %vm1113_vm3, %v3109_v55, 0.0  ;;  %v4665_v18 = vld [vmem:[#allocation41_spill] sm:$0xff] }
 0x2aa   : > { %3122 = vpow2.f32 %v1596_v11  ;;  %v1500_v3 = vsub.f32 %v4662_v60, %v1445_v29  ;;  %v1501_v52 = vsub.f32 %v4663_v47, %v1445_v29  ;;  %v1737_v5 = vadd.f32 %v3107_v22, %v1736_v33 }
 0x2ab   : > { %v3111_v19 = vpop.eup %3110  ;;  %3124 = vpow2.f32 %v1598_v4  ;;  %2916 = vmatprep.mubr.msk.bf16.mxu1 %vm1113_vm3, %v2018_v61 }
 0x2ac   : > { %v3113_v38 = vpop.eup %3112  ;;  %v1600_v8 = vmul.f32 1.442695, %v1500_v3  ;;  %v1602_v20 = vmul.f32 1.442695, %v1501_v52  ;;  %1738 = vadd.xlane.f32.xlu1 %v1737_v5  ;;  %2247 = vmatmul.mubr.bf16.gmra.mxu1 %v2017_v57 }
 0x2ad   : > { %v1450_v46 = vpop.permute.xlu0 %1449  ;;  %v1740_v63 = vsel %vm1113_vm3, %v3113_v38, 0.0 }
 0x2ae   : > { %3126 = vpow2.f32 %v1600_v8  ;;  %v1502_v9 = vsub.f32 %v4664_v15, %v1450_v46  ;;  %v1503_v27 = vsub.f32 %v4665_v18, %v1450_v46  ;;  %v1741_v35 = vadd.f32 %v3111_v19, %v1740_v63  ;;  %v4666_v18 = vld [vmem:[#allocation44_spill] sm:$0xff] }
 0x2af   : > { %v3115_v53 = vpop.eup %3114  ;;  %3128 = vpow2.f32 %v1602_v20 }
 0x2b0   : > { %v3117_v17 = vpop.eup %3116  ;;  %v1604_v59 = vmul.f32 1.442695, %v1502_v9  ;;  %v1606_v56 = vmul.f32 1.442695, %v1503_v27  ;;  %v2019_v13 = vpack.c.bf16 %v3115_v53, %v3111_v19  ;;  %1742 = vadd.xlane.f32.xlu0 %v1741_v35  ;;  %v4667_v27 = vld [vmem:[#allocation45_spill] sm:$0xff] }
 0x2b1   : > { %v2020_v10 = vpack.c.bf16 %v3117_v17, %v3113_v38  ;;  %v1744_v0 = vsel %vm1113_vm3, %v3117_v17, 0.0  ;;  %v4669_v17 = vld [vmem:[#allocation42_spill] sm:$0xff] }
 0x2b2   : > { %3130 = vpow2.f32 %v1604_v59  ;;  %v1745_v22 = vadd.f32 %v3115_v53, %v1744_v0  ;;  %v4668_v53 = vsub.f32 %v4666_v18, %v4667_v27  ;;  %v4670_v59 = vld [vmem:[#allocation43_spill] sm:$0xff]  ;;  %v4672_v0 = vsub.f32 %v3909_v26, %v3920_v36  ;;  %v1608_v18 = vld [vmem:[#allocation3] sm:$0xff] }
 0x2b3   : > { %v3119_v55 = vpop.eup %3118  ;;  %3132 = vpow2.f32 %v1606_v56  ;;  %2917 = vmatprep.mubr.msk.bf16.mxu1 %vm1113_vm3, %v2020_v10  ;;  %v4671_v56 = vsub.f32 %v4669_v17, %v4670_v59  ;;  %v1314_v10 = vmul.f32 1.442695, %v1266_v21  ;;  %v1320_v26 = vmul.f32 1.442695, %v1269_v31  ;;  %v1612_v17 = vld [vmem:[#allocation3 + $0x20] sm:$0xff] }
 0x2b4   : > { %v3121_v11 = vpop.eup %3120  ;;  %1746 = vadd.xlane.f32.xlu1 %v1745_v22  ;;  %2255 = vmatmul.mubr.bf16.gmra.mxu1 %v2019_v13  ;;  %v1310_v35 = vmul.f32 1.442695, %v4668_v53  ;;  %v1312_v22 = vmul.f32 1.442695, %v4672_v0 }
 0x2b5   : > { %v1748_v4 = vsel %vm1113_vm3, %v3121_v11, 0.0  ;;  %v1308_v13 = vmul.f32 1.442695, %v4671_v56 }
 0x2b6   : > { %v1749_v57 = vadd.f32 %v3119_v55, %v1748_v4  ;;  %3134 = vpow2.f32 %v1310_v35  ;;  %v1318_v4 = vmul.f32 1.442695, %v1268_v42  ;;  %v1634_v35 = vmul.f32 %v4053_v16, %v1608_v18 }
 0x2b7   : > { %v3123_v29 = vpop.eup %3122  ;;  %3136 = vpow2.f32 %v1308_v13  ;;  %v1611_v13 = vld [vmem:[#allocation3 + $0x18] sm:$0xff] }
 0x2b8   : > { %v3125_v61 = vpop.eup %3124  ;;  %1750 = vadd.xlane.f32.xlu0 %v1749_v57  ;;  %v2021_v33 = vpack.c.bf16 %v3123_v29, %v3119_v55  ;;  %v4240_v55 = vpop.permute.xlu1 %1850  ;;  %3138 = vpow2.f32 %v1314_v10 }
 0x2b9   : > { %v2022_v60 = vpack.c.bf16 %v3125_v61, %v3121_v11  ;;  %v1752_v3 = vsel %vm1113_vm3, %v3125_v61, 0.0  ;;  %v4242_v11 = vpop.permute.xlu0 %1845  ;;  %3140 = vpow2.f32 %v1312_v22  ;;  %v1637_v22 = vmul.f32 %v4063_v2, %v1611_v13  ;;  %v1615_v2 = vld [vmem:[#allocation3 + $0x38] sm:$0xff] }
 0x2ba   : > { %v1753_v47 = vadd.f32 %v3123_v29, %v1752_v3  ;;  %3142 = vpow2.f32 %v1318_v4  ;;  %v1614_v4 = vld [vmem:[#allocation3 + $0x30] sm:$0xff] }
 0x2bb   : > { %v3127_v52 = vpop.eup %3126  ;;  %2918 = vmatprep.mubr.msk.bf16.mxu1 %vm1113_vm3, %v2022_v60  ;;  %3144 = vpow2.f32 %v1316_v40 }
 0x2bc   : > { %v3129_v5 = vpop.eup %3128  ;;  %1754 = vadd.xlane.f32.xlu1 %v1753_v47  ;;  %2263 = vmatmul.mubr.bf16.gmra.mxu1 %v2021_v33  ;;  %v4250_v21 = vpop.permute.xlu1 %1855  ;;  %3146 = vpow2.f32 %v1320_v26  ;;  %v1613_v26 = vld [vmem:[#allocation3 + $0x28] sm:$0xff] }
 0x2bd   : > { %v1756_v19 = vsel %vm1113_vm3, %v3129_v5, 0.0  ;;  %v4255_v36 = vpop.permute.xlu0 %1860 }
 0x2be   : > { %v1757_v38 = vadd.f32 %v3127_v52, %v1756_v19 }
 0x2bf   : > { %v3131_v8 = vpop.eup %3130 }
 0x2c0   : > { %v3133_v20 = vpop.eup %3132  ;;  %1758 = vadd.xlane.f32.xlu0 %v1757_v38  ;;  %v2023_v46 = vpack.c.bf16 %v3131_v8, %v3127_v52  ;;  %v4261_v24 = vpop.permute.xlu1 %1865 }
 0x2c1   : > { %v2024_v63 = vpack.c.bf16 %v3133_v20, %v3129_v5  ;;  %v1760_v15 = vsel %vm1113_vm3, %v3133_v20, 0.0  ;;  %v4264_v6 = vpop.permute.xlu0 %1870 }
 0x2c2   : > { %v1761_v9 = vadd.f32 %v3131_v8, %v1760_v15  ;;  %v1609_v8 = vld [vmem:[#allocation3 + $0x8] sm:$0xff] }
 0x2c3   : > { %2919 = vmatprep.mubr.msk.bf16.mxu1 %vm1113_vm3, %v2024_v63  ;;  %v4257_v37 = vpop.eup %3134  ;;  %v1635_v20 = vmul.f32 %v4040_v23, %v1609_v8  ;;  %v1610_v63 = vld [vmem:[#allocation3 + $0x10] sm:$0xff]  ;;  %v1638_v23 = vmul.f32 %v4067_v39, %v1612_v17  ;;  %v1639_v39 = vmul.f32 %v4073_v32, %v1613_v26  ;;  %v1619_v26 = vld [vmem:[#allocation3 + $0x58] sm:$0xff] }
 0x2c4   : > { %1762 = vadd.xlane.f32.xlu1 %v1761_v9  ;;  %2271 = vmatmul.mubr.bf16.gmra.mxu1 %v2023_v46  ;;  %v4259_v14 = vpop.eup %3136  ;;  %v4273_v43 = vpop.permute.xlu1 %1875  ;;  %v1636_v27 = vmul.f32 %v4057_v49, %v1610_v63  ;;  %v1616_v63 = vld [vmem:[#allocation3 + $0x40] sm:$0xff] }
 0x2c5   : > { %v4267_v7 = vpop.eup %3138  ;;  %v4277_v34 = vpop.permute.xlu0 %1880 }
 0x2c6   : > { %v4269_v54 = vpop.eup %3140 }
 0x2c7   : > { %v4275_v42 = vpop.eup %3142 }
 0x2c8   : > { %v4279_v31 = vpop.eup %3144  ;;  %v4285_v29 = vpop.permute.xlu1 %1885 }
 0x2c9   : > { %v4283_v57 = vpop.eup %3146  ;;  %v4287_v61 = vpop.permute.xlu0 %1890 }
 0x2cc   : > { %v4290_v33 = vpop.permute.xlu1 %1895 }
 0x2cd   : > { %v4292_v60 = vpop.permute.xlu0 %1900 }
 0x2d0   : > { %v4294_v3 = vpop.permute.xlu1 %1905 }
 0x2d1   : > { %v4296_v47 = vpop.permute.xlu0 %1910 }
 0x2d4   : > { %v4298_v52 = vpop.permute.xlu1 %1915 }
 0x2d5   : > { %1945 = vperm.xlu1 %2952, %v4257_v37   ;;  %v4300_v5 = vpop.permute.xlu0 %1920 }
 0x2d6   : > { %1940 = vperm.xlu0 %2951, %v4259_v14  }
 0x2d8   : > { %v4302_v19 = vpop.permute.xlu1 %1925 }
 0x2d9   : > { %1955 = vperm.xlu1 %2952, %v4267_v7   ;;  %v4304_v38 = vpop.permute.xlu0 %1930 }
 0x2da   : > { %1950 = vperm.xlu0 %2951, %v4269_v54  }
 0x2dc   : > { %v4307_v15 = vpop.permute.xlu1 %1935 }
 0x2dd   : > { %1965 = vperm.xlu1 %2952, %v4275_v42  }
 0x2de   : > { %1960 = vperm.xlu0 %2951, %v4279_v31  }
 0x2e2   : > { %1970 = vperm.xlu0 %2951, %v4283_v57  }
 0x2fe   : > { %v1667_v46 = vpop.xlane.xlu0 %1666 }
 0x2ff   : > { %v1765_v9 = vadd.f32 %v1667_v46, %v1635_v20  ;;  %v1640_v20 = vmul.f32 %v4077_v28, %v1614_v4 }
 0x301   : > { %1792 = vst.msk [vmem:[#allocation3 + $0x8] sm:$0xff] %vm385_vm1, %v1765_v9 }
 0x302   : > { %v1671_v53 = vpop.xlane.xlu0 %1670 }
 0x303   : > { %v1766_v59 = vadd.f32 %v1671_v53, %v1636_v27  ;;  %v1663_v56 = vpop.xlane.xlu1 %1662 }
 0x304   : > { %v1764_v10 = vadd.f32 %v1663_v56, %v1634_v35  ;;  %v1642_v35 = vmul.f32 %v4087_v58, %v1616_v63  ;;  %v1618_v56 = vld [vmem:[#allocation3 + $0x50] sm:$0xff] }
 0x305   : > { %1793 = vst.msk [vmem:[#allocation3 + $0x10] sm:$0xff] %vm385_vm1, %v1766_v59  ;;  %v1641_v59 = vmul.f32 %v4083_v25, %v1615_v2 }
 0x306   : > { %1791 = vst.msk [vmem:[#allocation3] sm:$0xff] %vm385_vm1, %v1764_v10  ;;  %v1679_v0 = vpop.xlane.xlu0 %1678  ;;  %v1617_v10 = vld [vmem:[#allocation3 + $0x48] sm:$0xff] }
 0x307   : > { %v1768_v40 = vadd.f32 %v1679_v0, %v1638_v23  ;;  %v1675_v49 = vpop.xlane.xlu1 %1674 }
 0x308   : > { %v2362_v8 = vld [vmem:[#allocation3 + $0x8] sm:$0xff]  ;;  %v1767_v16 = vadd.f32 %v1675_v49, %v1637_v22  ;;  %v1644_v22 = vmul.f32 %v4093_v50, %v1618_v56  ;;  %v1645_v50 = vmul.f32 %v4097_v41, %v1619_v26  ;;  %v1622_v56 = vld [vmem:[#allocation3 + $0x70] sm:$0xff] }
 0x309   : > { %3148 = vrcp.f32 %v2362_v8  ;;  %1795 = vst.msk [vmem:[#allocation3 + $0x20] sm:$0xff] %vm385_vm1, %v1768_v40  ;;  %v1643_v40 = vmul.f32 %v4091_v1, %v1617_v10 }
 0x30a   : > { %1794 = vst.msk [vmem:[#allocation3 + $0x18] sm:$0xff] %vm385_vm1, %v1767_v16  ;;  %v1687_v46 = vpop.xlane.xlu0 %1686 }
 0x30b   : > { %v1770_v9 = vadd.f32 %v1687_v46, %v1640_v20  ;;  %v1683_v18 = vpop.xlane.xlu1 %1682  ;;  %v1620_v20 = vld [vmem:[#allocation3 + $0x60] sm:$0xff] }
 0x30c   : > { %v1769_v27 = vadd.f32 %v1683_v18, %v1639_v39  ;;  %v2363_v17 = vld [vmem:[#allocation3 + $0x10] sm:$0xff]  ;;  %v1646_v1 = vmul.f32 %v4099_v48, %v1620_v20 }
 0x30d   : > { %v2361_v53 = vld [vmem:[#allocation3] sm:$0xff]  ;;  %1797 = vst.msk [vmem:[#allocation3 + $0x30] sm:$0xff] %vm385_vm1, %v1770_v9 }
 0x30e   : > { %3150 = vrcp.f32 %v2361_v53  ;;  %1796 = vst.msk [vmem:[#allocation3 + $0x28] sm:$0xff] %vm385_vm1, %v1769_v27  ;;  %v1695_v28 = vpop.xlane.xlu0 %1694  ;;  %v1621_v27 = vld [vmem:[#allocation3 + $0x68] sm:$0xff] }
 0x30f   : > { %v1772_v13 = vadd.f32 %v1695_v28, %v1642_v35  ;;  %v1691_v32 = vpop.xlane.xlu1 %1690  ;;  %3152 = vrcp.f32 %v2363_v17  ;;  %v1647_v41 = vmul.f32 %v4105_v45, %v1621_v27  ;;  %v1623_v45 = vld [vmem:[#allocation3 + $0x78] sm:$0xff] }
 0x310   : > { %v1771_v23 = vadd.f32 %v1691_v32, %v1641_v59  ;;  %v2365_v4 = vld [vmem:[#allocation3 + $0x20] sm:$0xff] }
 0x311   : > { %v2364_v0 = vld [vmem:[#allocation3 + $0x18] sm:$0xff]  ;;  %1799 = vst.msk [vmem:[#allocation3 + $0x40] sm:$0xff] %vm385_vm1, %v1772_v13 }
 0x312   : > { %3154 = vrcp.f32 %v2364_v0  ;;  %1798 = vst.msk [vmem:[#allocation3 + $0x38] sm:$0xff] %vm385_vm1, %v1771_v23  ;;  %v1703_v58 = vpop.xlane.xlu0 %1702  ;;  %v1817_v23 = vld [vmem:[#allocation4] sm:$0xff]  ;;  %v1648_v0 = vmul.f32 %v4107_v62, %v1622_v56  ;;  %v1649_v62 = vmul.f32 %v4113_v44, %v1623_v45 }
 0x313   : > { %v1774_v49 = vadd.f32 %v1703_v58, %v1644_v22  ;;  %v1699_v25 = vpop.xlane.xlu1 %1698  ;;  %3156 = vrcp.f32 %v2365_v4 }
 0x314   : > { %v1773_v8 = vadd.f32 %v1699_v25, %v1643_v40  ;;  %v2367_v39 = vld [vmem:[#allocation3 + $0x30] sm:$0xff]  ;;  %v1973_v25 = vmul.f32 %v4242_v11, %v1817_v23 }
 0x315   : > { %v2366_v16 = vld [vmem:[#allocation3 + $0x28] sm:$0xff]  ;;  %1801 = vst.msk [vmem:[#allocation3 + $0x50] sm:$0xff] %vm385_vm1, %v1774_v49 }
 0x316   : > { %v3149_v46 = vpop.eup %3148  ;;  %3158 = vrcp.f32 %v2366_v16  ;;  %1800 = vst.msk [vmem:[#allocation3 + $0x48] sm:$0xff] %vm385_vm1, %v1773_v8  ;;  %v1818_v8 = vld [vmem:[#allocation4 + $0x8] sm:$0xff] }
 0x317   : > { %2447 = vperm.xlu0 %2951, %v3149_v46   ;;  %v1707_v63 = vpop.xlane.xlu1 %1706  ;;  %3160 = vrcp.f32 %v2367_v39  ;;  %v1624_v39 = vld [vmem:[#allocation3 + $0x80] sm:$0xff] }
 0x318   : > { %v1775_v9 = vadd.f32 %v1707_v63, %v1645_v50  ;;  %v2369_v53 = vld [vmem:[#allocation3 + $0x40] sm:$0xff]  ;;  %v1650_v44 = vmul.f32 %v4115_v30, %v1624_v39 }
 0x319   : > { %v2368_v18 = vld [vmem:[#allocation3 + $0x38] sm:$0xff]  ;;  %v1711_v2 = vpop.xlane.xlu0 %1710 }
 0x31a   : > { %3162 = vrcp.f32 %v2368_v18  ;;  %1802 = vst.msk [vmem:[#allocation3 + $0x58] sm:$0xff] %vm385_vm1, %v1775_v9  ;;  %v1776_v35 = vadd.f32 %v1711_v2, %v1646_v1  ;;  %v1974_v18 = vmul.f32 %v4240_v55, %v1818_v8  ;;  %v1819_v2 = vld [vmem:[#allocation4 + $0x10] sm:$0xff] }
 0x31b   : > { %v3151_v17 = vpop.eup %3150  ;;  %3164 = vrcp.f32 %v2369_v53  ;;  %v1975_v55 = vmul.f32 %v4250_v21, %v1819_v2 }
 0x31c   : > { %1803 = vst.msk [vmem:[#allocation3 + $0x60] sm:$0xff] %vm385_vm1, %v1776_v35  ;;  %2442 = vperm.xlu1 %2952, %v3151_v17   ;;  %v3153_v48 = vpop.eup %3152  ;;  %v2371_v13 = vld [vmem:[#allocation3 + $0x50] sm:$0xff]  ;;  %v1625_v17 = vld [vmem:[#allocation3 + $0x88] sm:$0xff] }
 0x31d   : > { %v2370_v28 = vld [vmem:[#allocation3 + $0x48] sm:$0xff]  ;;  %v1715_v59 = vpop.xlane.xlu1 %1714  ;;  %v1651_v30 = vmul.f32 %v4121_v51, %v1625_v17 }
 0x31e   : > { %3166 = vrcp.f32 %v2370_v28  ;;  %v1777_v32 = vadd.f32 %v1715_v59, %v1647_v41 }
 0x31f   : > { %v3155_v10 = vpop.eup %3154  ;;  %3168 = vrcp.f32 %v2371_v13  ;;  %v1820_v13 = vld [vmem:[#allocation4 + $0x18] sm:$0xff] }
 0x320   : > { %1804 = vst.msk [vmem:[#allocation3 + $0x68] sm:$0xff] %vm385_vm1, %v1777_v32  ;;  %2452 = vperm.xlu1 %2952, %v3153_v48   ;;  %2457 = vperm.xlu0 %2951, %v3155_v10   ;;  %v3157_v58 = vpop.eup %3156  ;;  %v1976_v21 = vmul.f32 %v4255_v36, %v1820_v13  ;;  %v1824_v13 = vld [vmem:[#allocation4 + $0x38] sm:$0xff] }
 0x321   : > { %v2372_v22 = vld [vmem:[#allocation3 + $0x58] sm:$0xff]  ;;  %v1719_v4 = vpop.xlane.xlu0 %1718 }
 0x322   : > { %3170 = vrcp.f32 %v2372_v22  ;;  %v1778_v40 = vadd.f32 %v1719_v4, %v1648_v0  ;;  %v1626_v0 = vld [vmem:[#allocation3 + $0x90] sm:$0xff] }
 0x323   : > { %v3159_v49 = vpop.eup %3158  ;;  %v2373_v26 = vld [vmem:[#allocation3 + $0x60] sm:$0xff] }
 0x324   : > { %1805 = vst.msk [vmem:[#allocation3 + $0x70] sm:$0xff] %vm385_vm1, %v1778_v40  ;;  %v2176_v16 = vpop.f32.mrf.mxu1  ;;  %2462 = vperm.xlu1 %2952, %v3157_v58   ;;  %2467 = vperm.xlu0 %2951, %v3159_v49   ;;  %v3161_v50 = vpop.eup %3160  ;;  %3172 = vrcp.f32 %v2373_v26  ;;  %v1821_v49 = vld [vmem:[#allocation4 + $0x20] sm:$0xff]  ;;  %v1652_v26 = vmul.f32 %v4123_v12, %v1626_v0 }
 0x325   : > { %v2279_v20 = vadd.f32 %v2176_v16, %v1973_v25  ;;  %v1723_v46 = vpop.xlane.xlu1 %1722  ;;  %v1627_v16 = vld [vmem:[#allocation3 + $0x98] sm:$0xff]  ;;  %v1977_v36 = vmul.f32 %v4261_v24, %v1821_v49  ;;  %v1630_v0 = vld [vmem:[#allocation3 + $0xb0] sm:$0xff] }
 0x326   : > { %v1779_v63 = vadd.f32 %v1723_v46, %v1649_v62  ;;  %v2178_v9 = vpop.f32.mrf.mxu1  ;;  %v1653_v12 = vmul.f32 %v4259_v14, %v1627_v16 }
 0x327   : > { %v3163_v1 = vpop.eup %3162  ;;  %v2374_v11 = vld [vmem:[#allocation3 + $0x68] sm:$0xff]  ;;  %2306 = vst.msk [vmem:[#allocation4] sm:$0xff] %vm438_vm4, %v2279_v20 }
 0x328   : > { %3174 = vrcp.f32 %v2374_v11  ;;  %1806 = vst.msk [vmem:[#allocation3 + $0x78] sm:$0xff] %vm385_vm1, %v1779_v63  ;;  %v2179_v27 = vpop.f32.mrf.mxu1  ;;  %2472 = vperm.xlu1 %2952, %v3161_v50   ;;  %2477 = vperm.xlu0 %2951, %v3163_v1   ;;  %v3165_v41 = vpop.eup %3164  ;;  %v1822_v50 = vld [vmem:[#allocation4 + $0x28] sm:$0xff] }
 0x329   : > { %v2280_v53 = vadd.f32 %v2179_v27, %v1974_v18  ;;  %v1727_v35 = vpop.xlane.xlu0 %1726  ;;  %v1628_v27 = vld [vmem:[#allocation3 + $0xa0] sm:$0xff]  ;;  %v1978_v24 = vmul.f32 %v4264_v6, %v1822_v50 }
 0x32a   : > { %v1780_v28 = vadd.f32 %v1727_v35, %v1650_v44  ;;  %v2181_v59 = vpop.f32.mrf.mxu1  ;;  %v1654_v14 = vmul.f32 %v4257_v37, %v1628_v27  ;;  %v1632_v50 = vld [vmem:[#allocation3 + $0xc0] sm:$0xff] }
 0x32b   : > { %v3167_v56 = vpop.eup %3166  ;;  %v2375_v48 = vld [vmem:[#allocation3 + $0x70] sm:$0xff]  ;;  %2307 = vst.msk [vmem:[#allocation4 + $0x8] sm:$0xff] %vm438_vm4, %v2280_v53  ;;  %v1823_v53 = vld [vmem:[#allocation4 + $0x30] sm:$0xff] }
 0x32c   : > { %3176 = vrcp.f32 %v2375_v48  ;;  %1807 = vst.msk [vmem:[#allocation3 + $0x80] sm:$0xff] %vm385_vm1, %v1780_v28  ;;  %v2184_v32 = vpop.f32.mrf.mxu1  ;;  %2482 = vperm.xlu1 %2952, %v3165_v41   ;;  %2487 = vperm.xlu0 %2951, %v3167_v56   ;;  %v3169_v22 = vpop.eup %3168  ;;  %v1629_v28 = vld [vmem:[#allocation3 + $0xa8] sm:$0xff] }
 0x32d   : > { %v2281_v10 = vadd.f32 %v2184_v32, %v1975_v55  ;;  %v1731_v23 = vpop.xlane.xlu1 %1730  ;;  %v1979_v55 = vmul.f32 %v4273_v43, %v1823_v53  ;;  %v1980_v43 = vmul.f32 %v4277_v34, %v1824_v13  ;;  %v1826_v34 = vld [vmem:[#allocation4 + $0x48] sm:$0xff] }
 0x32e   : > { %v1781_v4 = vadd.f32 %v1731_v23, %v1651_v30  ;;  %v2186_v45 = vpop.f32.mrf.mxu1  ;;  %v1655_v30 = vmul.f32 %v4269_v54, %v1629_v28  ;;  %v1656_v54 = vmul.f32 %v4267_v7, %v1630_v0 }
 0x32f   : > { %v3171_v58 = vpop.eup %3170  ;;  %v2376_v40 = vld [vmem:[#allocation3 + $0x78] sm:$0xff]  ;;  %2308 = vst.msk [vmem:[#allocation4 + $0x10] sm:$0xff] %vm438_vm4, %v2281_v10 }
 0x330   : > { %3178 = vrcp.f32 %v2376_v40  ;;  %1808 = vst.msk [vmem:[#allocation3 + $0x88] sm:$0xff] %vm385_vm1, %v1781_v4  ;;  %v2187_v25 = vpop.f32.mrf.mxu1  ;;  %2492 = vperm.xlu1 %2952, %v3169_v22   ;;  %2497 = vperm.xlu0 %2951, %v3171_v58   ;;  %v1825_v58 = vld [vmem:[#allocation4 + $0x40] sm:$0xff] }
 0x331   : > { %v2282_v51 = vadd.f32 %v2187_v25, %v1976_v21  ;;  %v1735_v8 = vpop.xlane.xlu0 %1734  ;;  %v3173_v46 = vpop.eup %3172  ;;  %v1981_v16 = vmul.f32 %v4285_v29, %v1825_v58  ;;  %v1831_v58 = vld [vmem:[#allocation4 + $0x70] sm:$0xff] }
 0x332   : > { %v1782_v62 = vadd.f32 %v1735_v8, %v1652_v26  ;;  %v2189_v20 = vpop.f32.mrf.mxu1  ;;  %v1631_v26 = vld [vmem:[#allocation3 + $0xb8] sm:$0xff] }
 0x333   : > { %v2377_v39 = vld [vmem:[#allocation3 + $0x80] sm:$0xff]  ;;  %2309 = vst.msk [vmem:[#allocation4 + $0x18] sm:$0xff] %vm438_vm4, %v2282_v51 }
 0x334   : > { %3180 = vrcp.f32 %v2377_v39  ;;  %1809 = vst.msk [vmem:[#allocation3 + $0x90] sm:$0xff] %vm385_vm1, %v1782_v62  ;;  %v2192_v63 = vpop.f32.mrf.mxu1  ;;  %2502 = vperm.xlu1 %2952, %v3173_v46   ;;  %v1657_v46 = vmul.f32 %v4279_v31, %v1631_v26  ;;  %v1658_v31 = vmul.f32 %v4275_v42, %v1632_v50 }
 0x335   : > { %v3175_v9 = vpop.eup %3174  ;;  %v2283_v1 = vadd.f32 %v2192_v63, %v1977_v36  ;;  %v1739_v18 = vpop.xlane.xlu1 %1738 }
 0x336   : > { %v1783_v11 = vadd.f32 %v1739_v18, %v1653_v12  ;;  %v2194_v2 = vpop.f32.mrf.mxu1  ;;  %2507 = vperm.xlu0 %2951, %v3175_v9   ;;  %v1982_v9 = vmul.f32 %v4287_v61, %v1826_v34  ;;  %v1833_v34 = vld [vmem:[#allocation4 + $0x80] sm:$0xff] }
 0x337   : > { %v2378_v44 = vld [vmem:[#allocation3 + $0x88] sm:$0xff]  ;;  %2310 = vst.msk [vmem:[#allocation4 + $0x20] sm:$0xff] %vm438_vm4, %v2283_v1  ;;  %v1827_v1 = vld [vmem:[#allocation4 + $0x50] sm:$0xff] }
 0x338   : > { %3182 = vrcp.f32 %v2378_v44  ;;  %1810 = vst.msk [vmem:[#allocation3 + $0x98] sm:$0xff] %vm385_vm1, %v1783_v11  ;;  %v2195_v35 = vpop.f32.mrf.mxu1 }
 0x339   : > { %v3177_v17 = vpop.eup %3176  ;;  %v2284_v41 = vadd.f32 %v2195_v35, %v1978_v24  ;;  %v1743_v59 = vpop.xlane.xlu0 %1742  ;;  %v1633_v24 = vld [vmem:[#allocation3 + $0xc8] sm:$0xff]  ;;  %v1983_v35 = vmul.f32 %v4290_v33, %v1827_v1  ;;  %v1829_v33 = vld [vmem:[#allocation4 + $0x60] sm:$0xff] }
 0x33a   : > { %v2197_v56 = vpop.f32.mrf.mxu1  ;;  %2512 = vperm.xlu1 %2952, %v3177_v17   ;;  %v1784_v6 = vadd.f32 %v1743_v59, %v1654_v14  ;;  %v1828_v17 = vld [vmem:[#allocation4 + $0x58] sm:$0xff]  ;;  %v1659_v14 = vmul.f32 %v4283_v57, %v1633_v24  ;;  %v1985_v57 = vmul.f32 %v4294_v3, %v1829_v33 }
 0x33b   : > { %v2379_v48 = vld [vmem:[#allocation3 + $0x90] sm:$0xff]  ;;  %2311 = vst.msk [vmem:[#allocation4 + $0x28] sm:$0xff] %vm438_vm4, %v2284_v41 }
 0x33c   : > { %3184 = vrcp.f32 %v2379_v48  ;;  %v2200_v32 = vpop.f32.mrf.mxu1  ;;  %1811 = vst.msk [vmem:[#allocation3 + $0xa0] sm:$0xff] %vm385_vm1, %v1784_v6  ;;  %v1984_v48 = vmul.f32 %v4292_v60, %v1828_v17 }
 0x33d   : > { %v3179_v10 = vpop.eup %3178  ;;  %v2285_v23 = vadd.f32 %v2200_v32, %v1979_v55  ;;  %v1747_v37 = vpop.xlane.xlu1 %1746 }
 0x33e   : > { %v1785_v22 = vadd.f32 %v1747_v37, %v1655_v30  ;;  %v2202_v4 = vpop.f32.mrf.mxu1  ;;  %2517 = vperm.xlu0 %2951, %v3179_v10   ;;  %v1830_v37 = vld [vmem:[#allocation4 + $0x68] sm:$0xff] }
 0x33f   : > { %v2380_v45 = vld [vmem:[#allocation3 + $0x98] sm:$0xff]  ;;  %2312 = vst.msk [vmem:[#allocation4 + $0x30] sm:$0xff] %vm438_vm4, %v2285_v23 }
 0x340   : > { %3186 = vrcp.f32 %v2380_v45  ;;  %1812 = vst.msk [vmem:[#allocation3 + $0xa8] sm:$0xff] %vm385_vm1, %v1785_v22  ;;  %v2203_v21 = vpop.f32.mrf.mxu1 }
 0x341   : > { %v3181_v40 = vpop.eup %3180  ;;  %v2286_v49 = vadd.f32 %v2203_v21, %v1980_v43  ;;  %v1751_v25 = vpop.xlane.xlu0 %1750  ;;  %v1986_v43 = vmul.f32 %v4296_v47, %v1830_v37 }
 0x342   : > { %v1786_v51 = vadd.f32 %v1751_v25, %v1656_v54  ;;  %v2205_v8 = vpop.f32.mrf.mxu1  ;;  %2522 = vperm.xlu1 %2952, %v3181_v40   ;;  %v1832_v25 = vld [vmem:[#allocation4 + $0x78] sm:$0xff] }
 0x343   : > { %2313 = vst.msk [vmem:[#allocation4 + $0x38] sm:$0xff] %vm438_vm4, %v2286_v49  ;;  %v2381_v62 = vld [vmem:[#allocation3 + $0xa0] sm:$0xff]  ;;  %v1987_v49 = vmul.f32 %v4298_v52, %v1831_v58  ;;  %v1988_v47 = vmul.f32 %v4300_v5, %v1832_v25  ;;  %v1989_v52 = vmul.f32 %v4302_v19, %v1833_v34  ;;  %v1836_v19 = vld [vmem:[#allocation4 + $0x98] sm:$0xff]  ;;  %v2415_v34 = vld [vmem:[#allocation4 + $0x8] sm:$0xff] }
 0x344   : > { %1813 = vst.msk [vmem:[#allocation3 + $0xb0] sm:$0xff] %vm385_vm1, %v1786_v51  ;;  %v2208_v20 = vpop.f32.mrf.mxu1  ;;  %3188 = vrcp.f32 %v2381_v62 }
 0x345   : > { %v3183_v36 = vpop.eup %3182  ;;  %v2287_v7 = vadd.f32 %v2208_v20, %v1981_v16  ;;  %v1755_v39 = vpop.xlane.xlu1 %1754 }
 0x346   : > { %v1787_v63 = vadd.f32 %v1755_v39, %v1657_v46  ;;  %v2210_v12 = vpop.f32.mrf.mxu1  ;;  %2527 = vperm.xlu0 %2951, %v3183_v36  }
 0x347   : > { %v2382_v29 = vld [vmem:[#allocation3 + $0xa8] sm:$0xff]  ;;  %2314 = vst.msk [vmem:[#allocation4 + $0x40] sm:$0xff] %vm438_vm4, %v2287_v7  ;;  %v1834_v7 = vld [vmem:[#allocation4 + $0x88] sm:$0xff] }
 0x348   : > { %3190 = vrcp.f32 %v2382_v29  ;;  %1814 = vst.msk [vmem:[#allocation3 + $0xb8] sm:$0xff] %vm385_vm1, %v1787_v63  ;;  %v2211_v18 = vpop.f32.mrf.mxu1  ;;  %v1990_v5 = vmul.f32 %v4304_v38, %v1834_v7 }
 0x349   : > { %v3185_v11 = vpop.eup %3184  ;;  %v2288_v2 = vadd.f32 %v2211_v18, %v1982_v9  ;;  %v1759_v27 = vpop.xlane.xlu0 %1758  ;;  %v1835_v9 = vld [vmem:[#allocation4 + $0x90] sm:$0xff] }
 0x34a   : > { %v1788_v44 = vadd.f32 %v1759_v27, %v1658_v31  ;;  %v2213_v53 = vpop.f32.mrf.mxu1  ;;  %2532 = vperm.xlu1 %2952, %v3185_v11   ;;  %v1991_v31 = vmul.f32 %v4307_v15, %v1835_v9  ;;  %v2416_v9 = vld [vmem:[#allocation4 + $0x10] sm:$0xff] }
 0x34b   : > { %v2383_v61 = vld [vmem:[#allocation3 + $0xb0] sm:$0xff]  ;;  %2315 = vst.msk [vmem:[#allocation4 + $0x48] sm:$0xff] %vm438_vm4, %v2288_v2 }
 0x34c   : > { %3192 = vrcp.f32 %v2383_v61  ;;  %1815 = vst.msk [vmem:[#allocation3 + $0xc0] sm:$0xff] %vm385_vm1, %v1788_v44  ;;  %v2216_v41 = vpop.f32.mrf.mxu1  ;;  %v1837_v53 = vld [vmem:[#allocation4 + $0xa0] sm:$0xff] }
 0x34d   : > { %v3187_v42 = vpop.eup %3186  ;;  %v2289_v28 = vadd.f32 %v2216_v41, %v1983_v35  ;;  %v1763_v59 = vpop.xlane.xlu1 %1762 }
 0x34e   : > { %v1789_v56 = vadd.f32 %v1763_v59, %v1659_v14  ;;  %v2218_v55 = vpop.f32.mrf.mxu1  ;;  %2537 = vperm.xlu0 %2951, %v3187_v42   ;;  %v1838_v14 = vld [vmem:[#allocation4 + $0xa8] sm:$0xff] }
 0x34f   : > { %v2384_v6 = vld [vmem:[#allocation3 + $0xb8] sm:$0xff]  ;;  %2316 = vst.msk [vmem:[#allocation4 + $0x50] sm:$0xff] %vm438_vm4, %v2289_v28  ;;  %v1839_v55 = vld [vmem:[#allocation4 + $0xb0] sm:$0xff] }
 0x350   : > { %3194 = vrcp.f32 %v2384_v6  ;;  %1816 = vst.msk [vmem:[#allocation3 + $0xc8] sm:$0xff] %vm385_vm1, %v1789_v56  ;;  %v2219_v13 = vpop.f32.mrf.mxu1 }
 0x351   : > { %v2290_v32 = vadd.f32 %v2219_v13, %v1984_v48  ;;  %v3189_v30 = vpop.eup %3188  ;;  %v1941_v11 = vpop.permute.xlu0 %1940 }
 0x352   : > { %v2221_v10 = vpop.f32.mrf.mxu1  ;;  %2542 = vperm.xlu1 %2952, %v3189_v30   ;;  %v1992_v44 = vmul.f32 %v1941_v11, %v1836_v19  ;;  %v1946_v38 = vpop.permute.xlu1 %1945  ;;  %v1840_v30 = vld [vmem:[#allocation4 + $0xb8] sm:$0xff]  ;;  %v2625_v11 = vld [vmem:[%s4409_s12 + $0x10] sm:$0xff] }
 0x353   : > { %v2385_v23 = vld [vmem:[#allocation3 + $0xc0] sm:$0xff]  ;;  %2317 = vst.msk [vmem:[#allocation4 + $0x58] sm:$0xff] %vm438_vm4, %v2290_v32  ;;  %v1993_v41 = vmul.f32 %v1946_v38, %v1837_v53  ;;  %v2626_v19 = vld [vmem:[%s4409_s12 + $0x18] sm:$0xff]  ;;  %v2418_v53 = vld [vmem:[#allocation4 + $0x20] sm:$0xff] }
 0x354   : > { %3196 = vrcp.f32 %v2385_v23  ;;  %v2224_v60 = vpop.f32.mrf.mxu1 }
 0x355   : > { %v3191_v0 = vpop.eup %3190  ;;  %v2291_v22 = vadd.f32 %v2224_v60, %v1985_v57  ;;  %v1951_v15 = vpop.permute.xlu0 %1950 }
 0x356   : > { %v2226_v4 = vpop.f32.mrf.mxu1  ;;  %2547 = vperm.xlu0 %2951, %v3191_v0   ;;  %v1994_v56 = vmul.f32 %v1951_v15, %v1838_v14  ;;  %v1956_v48 = vpop.permute.xlu1 %1955  ;;  %v1841_v0 = vld [vmem:[#allocation4 + $0xc0] sm:$0xff]  ;;  %v2628_v14 = vld [vmem:[%s4409_s12 + $0x28] sm:$0xff] }
 0x357   : > { %v2386_v45 = vld [vmem:[#allocation3 + $0xc8] sm:$0xff]  ;;  %2318 = vst.msk [vmem:[#allocation4 + $0x60] sm:$0xff] %vm438_vm4, %v2291_v22  ;;  %v1995_v32 = vmul.f32 %v1956_v48, %v1839_v55  ;;  %v2627_v15 = vld [vmem:[%s4409_s12 + $0x20] sm:$0xff]  ;;  %v2420_v55 = vld [vmem:[#allocation4 + $0x30] sm:$0xff] }
 0x358   : > { %3198 = vrcp.f32 %v2386_v45  ;;  %v2227_v21 = vpop.f32.mrf.mxu1 }
 0x359   : > { %v3193_v3 = vpop.eup %3192  ;;  %v2292_v54 = vadd.f32 %v2227_v21, %v1986_v43  ;;  %v1961_v10 = vpop.permute.xlu0 %1960  ;;  %v1842_v21 = vld [vmem:[#allocation4 + $0xc8] sm:$0xff] }
 0x35a   : > { %v2229_v40 = vpop.f32.mrf.mxu1  ;;  %2552 = vperm.xlu1 %2952, %v3193_v3   ;;  %v1996_v60 = vmul.f32 %v1961_v10, %v1840_v30  ;;  %v1966_v22 = vpop.permute.xlu1 %1965  ;;  %v2630_v30 = vld [vmem:[%s4409_s12 + $0x38] sm:$0xff]  ;;  %v2629_v10 = vld [vmem:[%s4409_s12 + $0x30] sm:$0xff] }
 0x35b   : > { %2319 = vst.msk [vmem:[#allocation4 + $0x68] sm:$0xff] %vm438_vm4, %v2292_v54  ;;  %v1997_v58 = vmul.f32 %v1966_v22, %v1841_v0  ;;  %v2422_v0 = vld [vmem:[#allocation4 + $0x40] sm:$0xff] }
 0x35c   : > { %v2232_v26 = vpop.f32.mrf.mxu1 }
 0x35d   : > { %v3195_v51 = vpop.eup %3194  ;;  %v2293_v8 = vadd.f32 %v2232_v26, %v1987_v49  ;;  %v1971_v3 = vpop.permute.xlu0 %1970 }
 0x35e   : > { %v2234_v16 = vpop.f32.mrf.mxu1  ;;  %2557 = vperm.xlu0 %2951, %v3195_v51   ;;  %v1998_v25 = vmul.f32 %v1971_v3, %v1842_v21  ;;  %v2632_v21 = vld [vmem:[%s4409_s12 + $0x48] sm:$0xff]  ;;  %v2631_v3 = vld [vmem:[%s4409_s12 + $0x40] sm:$0xff] }
 0x35f   : > { %2320 = vst.msk [vmem:[#allocation4 + $0x70] sm:$0xff] %vm438_vm4, %v2293_v8  ;;  %v4411_v16 = vstv %s2413_s8 }
 0x360   : > { %v2235_v62 = vpop.f32.mrf.mxu1 }
 0x361   : > { %v3197_v20 = vpop.eup %3196  ;;  %v2294_v46 = vadd.f32 %v2235_v62, %v1988_v47 }
 0x362   : > { %v2237_v36 = vpop.f32.mrf.mxu1  ;;  %2562 = vperm.xlu1 %2952, %v3197_v20   ;;  %v2624_v20 = vld [vmem:[%s4409_s12 + $0x8] sm:$0xff] }
 0x363   : > { %2321 = vst.msk [vmem:[#allocation4 + $0x78] sm:$0xff] %vm438_vm4, %v2294_v46 }
 0x364   : > { %v2240_v39 = vpop.f32.mrf.mxu1 }
 0x365   : > { %v3199_v50 = vpop.eup %3198  ;;  %v2295_v63 = vadd.f32 %v2240_v39, %v1989_v52  ;;  %v2414_v52 = vld [vmem:[#allocation4] sm:$0xff] }
 0x366   : > { %v2242_v12 = vpop.f32.mrf.mxu1  ;;  %2567 = vperm.xlu0 %2951, %v3199_v50   ;;  %v2623_v50 = vld [vmem:[%s4409_s12] sm:$0xff] }
 0x367   : > { %2322 = vst.msk [vmem:[#allocation4 + $0x80] sm:$0xff] %vm438_vm4, %v2295_v63  ;;  %v2417_v12 = vld [vmem:[#allocation4 + $0x18] sm:$0xff] }
 0x368   : > { %v2243_v29 = vpop.f32.mrf.mxu1 }
 0x369   : > { %v2296_v1 = vadd.f32 %v2243_v29, %v1990_v5 }
 0x36a   : > { %v2245_v18 = vpop.f32.mrf.mxu1 }
 0x36b   : > { %2323 = vst.msk [vmem:[#allocation4 + $0x88] sm:$0xff] %vm438_vm4, %v2296_v1 }
 0x36c   : > { %v2248_v2 = vpop.f32.mrf.mxu1 }
 0x36d   : > { %v2297_v27 = vadd.f32 %v2248_v2, %v1991_v31 }
 0x36e   : > { %v2250_v24 = vpop.f32.mrf.mxu1 }
 0x36f   : > { %2324 = vst.msk [vmem:[#allocation4 + $0x90] sm:$0xff] %vm438_vm4, %v2297_v27  ;;  %v2419_v24 = vld [vmem:[#allocation4 + $0x28] sm:$0xff] }
 0x370   : > { %v2251_v35 = vpop.f32.mrf.mxu1 }
 0x371   : > { %v2298_v61 = vadd.f32 %v2251_v35, %v1992_v44 }
 0x372   : > { %v2253_v17 = vpop.f32.mrf.mxu1 }
 0x373   : > { %2325 = vst.msk [vmem:[#allocation4 + $0x98] sm:$0xff] %vm438_vm4, %v2298_v61 }
 0x374   : > { %v2256_v42 = vpop.f32.mrf.mxu1 }
 0x375   : > { %v2299_v28 = vadd.f32 %v2256_v42, %v1993_v41 }
 0x376   : > { %v2258_v59 = vpop.f32.mrf.mxu1 }
 0x377   : > { %2326 = vst.msk [vmem:[#allocation4 + $0xa0] sm:$0xff] %vm438_vm4, %v2299_v28  ;;  %v2421_v59 = vld [vmem:[#allocation4 + $0x38] sm:$0xff] }
 0x378   : > { %v2259_v6 = vpop.f32.mrf.mxu1 }
 0x379   : > { %v2300_v33 = vadd.f32 %v2259_v6, %v1994_v56 }
 0x37a   : > { %v2261_v13 = vpop.f32.mrf.mxu1 }
 0x37b   : > { %2327 = vst.msk [vmem:[#allocation4 + $0xa8] sm:$0xff] %vm438_vm4, %v2300_v33 }
 0x37c   : > { %v2264_v57 = vpop.f32.mrf.mxu1 }
 0x37d   : > { %v2301_v23 = vadd.f32 %v2264_v57, %v1995_v32 }
 0x37e   : > { %v2266_v37 = vpop.f32.mrf.mxu1 }
 0x37f   : > { %2328 = vst.msk [vmem:[#allocation4 + $0xb0] sm:$0xff] %vm438_vm4, %v2301_v23  ;;  %v2423_v37 = vld [vmem:[#allocation4 + $0x48] sm:$0xff] }
 0x380   : > { %v2267_v4 = vpop.f32.mrf.mxu1 }
 0x381   : > { %v2302_v43 = vadd.f32 %v2267_v4, %v1996_v60 }
 0x382   : > { %v2269_v45 = vpop.f32.mrf.mxu1 }
 0x383   : > { %2329 = vst.msk [vmem:[#allocation4 + $0xb8] sm:$0xff] %vm438_vm4, %v2302_v43 }
 0x384   : > { %v2272_v54 = vpop.f32.mrf.mxu1 }
 0x385   : > { %v2303_v40 = vadd.f32 %v2272_v54, %v1997_v58 }
 0x386   : > { %v2274_v49 = vpop.f32.mrf.mxu1 }
 0x387   : > { %2330 = vst.msk [vmem:[#allocation4 + $0xc0] sm:$0xff] %vm438_vm4, %v2303_v40  ;;  %v2425_v49 = vld [vmem:[#allocation4 + $0x58] sm:$0xff] }
 0x388   : > { %v2275_v26 = vpop.f32.mrf.mxu1 }
 0x389   : > { %v2304_v51 = vadd.f32 %v2275_v26, %v1998_v25  ;;  %v2424_v26 = vld [vmem:[#allocation4 + $0x50] sm:$0xff] }
 0x38a   : > { %v2277_v8 = vpop.f32.mrf.mxu1 }
 0x38b   : > { %2331 = vst.msk [vmem:[#allocation4 + $0xc8] sm:$0xff] %vm438_vm4, %v2304_v51 }
 0x392   : > { %v2448_v47 = vpop.permute.xlu0 %2447 }
 0x393   : > { %v2571_v62 = vmul.f32 %v2448_v47, %v2415_v34 }
 0x395   : > { %v2598_v46 = vmul.f32 %v4411_v16, %v2571_v62 }
 0x397   : > { %v2650_v36 = vadd.f32 %v2624_v20, %v2598_v46  ;;  %v2443_v7 = vpop.permute.xlu1 %2442  ;;  %v2634_v20 = vld [vmem:[%s4409_s12 + $0x58] sm:$0xff]  ;;  %v2633_v46 = vld [vmem:[%s4409_s12 + $0x50] sm:$0xff] }
 0x398   : > { %v2570_v39 = vmul.f32 %v2443_v7, %v2414_v52  ;;  %v2426_v7 = vld [vmem:[#allocation4 + $0x60] sm:$0xff] }
 0x399   : > { %2676 = vst.msk [vmem:[%s4418_s15 + $0x8] sm:$0xff] %vm438_vm4, %v2650_v36 }
 0x39a   : > { %v2597_v63 = vmul.f32 %v4411_v16, %v2570_v39 }
 0x39b   : > { %v2458_v5 = vpop.permute.xlu0 %2457  ;;  %v2453_v29 = vpop.permute.xlu1 %2452 }
 0x39c   : > { %v2649_v1 = vadd.f32 %v2623_v50, %v2597_v63  ;;  %v2573_v18 = vmul.f32 %v2458_v5, %v2417_v12  ;;  %v2572_v31 = vmul.f32 %v2453_v29, %v2416_v9  ;;  %v2635_v5 = vld [vmem:[%s4409_s12 + $0x60] sm:$0xff]  ;;  %v2427_v9 = vld [vmem:[#allocation4 + $0x68] sm:$0xff] }
 0x39e   : > { %2675 = vst.msk [vmem:[%s4418_s15] sm:$0xff] %vm438_vm4, %v2649_v1  ;;  %v2600_v2 = vmul.f32 %v4411_v16, %v2573_v18  ;;  %v2599_v27 = vmul.f32 %v4411_v16, %v2572_v31  ;;  %v2636_v31 = vld [vmem:[%s4409_s12 + $0x68] sm:$0xff] }
 0x39f   : > { %v2468_v44 = vpop.permute.xlu0 %2467  ;;  %v2463_v38 = vpop.permute.xlu1 %2462 }
 0x3a0   : > { %v2652_v35 = vadd.f32 %v2626_v19, %v2600_v2  ;;  %v2651_v61 = vadd.f32 %v2625_v11, %v2599_v27  ;;  %v2575_v17 = vmul.f32 %v2468_v44, %v2419_v24  ;;  %v2574_v41 = vmul.f32 %v2463_v38, %v2418_v53  ;;  %v2428_v2 = vld [vmem:[#allocation4 + $0x70] sm:$0xff] }
 0x3a1   : > { %v2637_v53 = vld [vmem:[%s4409_s12 + $0x70] sm:$0xff] }
 0x3a2   : > { %2678 = vst.msk [vmem:[%s4418_s15 + $0x18] sm:$0xff] %vm438_vm4, %v2652_v35  ;;  %2677 = vst.msk [vmem:[%s4418_s15 + $0x10] sm:$0xff] %vm438_vm4, %v2651_v61  ;;  %v2602_v42 = vmul.f32 %v4411_v16, %v2575_v17  ;;  %v2601_v28 = vmul.f32 %v4411_v16, %v2574_v41  ;;  %v2429_v35 = vld [vmem:[#allocation4 + $0x78] sm:$0xff] }
 0x3a3   : > { %v2478_v56 = vpop.permute.xlu0 %2477  ;;  %v2473_v48 = vpop.permute.xlu1 %2472 }
 0x3a4   : > { %v2654_v6 = vadd.f32 %v2628_v14, %v2602_v42  ;;  %v2653_v33 = vadd.f32 %v2627_v15, %v2601_v28  ;;  %v2577_v13 = vmul.f32 %v2478_v56, %v2421_v59  ;;  %v2576_v32 = vmul.f32 %v2473_v48, %v2420_v55  ;;  %v2638_v14 = vld [vmem:[%s4409_s12 + $0x78] sm:$0xff]  ;;  %v2430_v42 = vld [vmem:[#allocation4 + $0x80] sm:$0xff] }
 0x3a5   : > { %v2639_v55 = vld [vmem:[%s4409_s12 + $0x80] sm:$0xff] }
 0x3a6   : > { %2680 = vst.msk [vmem:[%s4418_s15 + $0x28] sm:$0xff] %vm438_vm4, %v2654_v6  ;;  %2679 = vst.msk [vmem:[%s4418_s15 + $0x20] sm:$0xff] %vm438_vm4, %v2653_v33  ;;  %v2604_v57 = vmul.f32 %v4411_v16, %v2577_v13  ;;  %v2603_v23 = vmul.f32 %v4411_v16, %v2576_v32  ;;  %v2431_v6 = vld [vmem:[#allocation4 + $0x88] sm:$0xff] }
 0x3a7   : > { %v2488_v60 = vpop.permute.xlu0 %2487  ;;  %v2483_v22 = vpop.permute.xlu1 %2482 }
 0x3a8   : > { %v2656_v4 = vadd.f32 %v2630_v30, %v2604_v57  ;;  %v2655_v43 = vadd.f32 %v2629_v10, %v2603_v23  ;;  %v2579_v45 = vmul.f32 %v2488_v60, %v2423_v37  ;;  %v2578_v58 = vmul.f32 %v2483_v22, %v2422_v0  ;;  %v2640_v30 = vld [vmem:[%s4409_s12 + $0x88] sm:$0xff]  ;;  %v2432_v57 = vld [vmem:[#allocation4 + $0x90] sm:$0xff] }
 0x3a9   : > { %v2641_v0 = vld [vmem:[%s4409_s12 + $0x90] sm:$0xff] }
 0x3aa   : > { %2682 = vst.msk [vmem:[%s4418_s15 + $0x38] sm:$0xff] %vm438_vm4, %v2656_v4  ;;  %2681 = vst.msk [vmem:[%s4418_s15 + $0x30] sm:$0xff] %vm438_vm4, %v2655_v43  ;;  %v2606_v54 = vmul.f32 %v4411_v16, %v2579_v45  ;;  %v2605_v40 = vmul.f32 %v4411_v16, %v2578_v58  ;;  %v2433_v4 = vld [vmem:[#allocation4 + $0x98] sm:$0xff] }
 0x3ab   : > { %v2498_v25 = vpop.permute.xlu0 %2497  ;;  %v2493_v51 = vpop.permute.xlu1 %2492 }
 0x3ac   : > { %v2658_v8 = vadd.f32 %v2632_v21, %v2606_v54  ;;  %v2657_v47 = vadd.f32 %v2631_v3, %v2605_v40  ;;  %v2581_v34 = vmul.f32 %v2498_v25, %v2425_v49  ;;  %v2580_v62 = vmul.f32 %v2493_v51, %v2424_v26  ;;  %v2642_v21 = vld [vmem:[%s4409_s12 + $0x98] sm:$0xff]  ;;  %v2434_v40 = vld [vmem:[#allocation4 + $0xa0] sm:$0xff] }
 0x3ad   : > { %v2643_v26 = vld [vmem:[%s4409_s12 + $0xa0] sm:$0xff] }
 0x3ae   : > { %2684 = vst.msk [vmem:[%s4418_s15 + $0x48] sm:$0xff] %vm438_vm4, %v2658_v8  ;;  %2683 = vst.msk [vmem:[%s4418_s15 + $0x40] sm:$0xff] %vm438_vm4, %v2657_v47  ;;  %v2608_v36 = vmul.f32 %v4411_v16, %v2581_v34  ;;  %v2607_v52 = vmul.f32 %v4411_v16, %v2580_v62  ;;  %v2435_v8 = vld [vmem:[#allocation4 + $0xa8] sm:$0xff] }
 0x3af   : > { %v2503_v39 = vpop.permute.xlu1 %2502 }
 0x3b0   : > { %v2660_v50 = vadd.f32 %v2634_v20, %v2608_v36  ;;  %v2659_v63 = vadd.f32 %v2633_v46, %v2607_v52  ;;  %v2582_v12 = vmul.f32 %v2503_v39, %v2426_v7  ;;  %v2644_v20 = vld [vmem:[%s4409_s12 + $0xa8] sm:$0xff]  ;;  %v2436_v36 = vld [vmem:[#allocation4 + $0xb0] sm:$0xff] }
 0x3b1   : > { %v2508_v29 = vpop.permute.xlu0 %2507 }
 0x3b2   : > { %2686 = vst.msk [vmem:[%s4418_s15 + $0x58] sm:$0xff] %vm438_vm4, %v2660_v50  ;;  %2685 = vst.msk [vmem:[%s4418_s15 + $0x50] sm:$0xff] %vm438_vm4, %v2659_v63  ;;  %v2609_v1 = vmul.f32 %v4411_v16, %v2582_v12  ;;  %v2583_v18 = vmul.f32 %v2508_v29, %v2427_v9  ;;  %v2645_v50 = vld [vmem:[%s4409_s12 + $0xb0] sm:$0xff]  ;;  %v2437_v12 = vld [vmem:[#allocation4 + $0xb8] sm:$0xff] }
 0x3b4   : > { %v2661_v19 = vadd.f32 %v2635_v5, %v2609_v1  ;;  %v2610_v11 = vmul.f32 %v4411_v16, %v2583_v18  ;;  %v2646_v1 = vld [vmem:[%s4409_s12 + $0xb8] sm:$0xff] }
 0x3b5   : > { %v2513_v27 = vpop.permute.xlu1 %2512 }
 0x3b6   : > { %2687 = vst.msk [vmem:[%s4418_s15 + $0x60] sm:$0xff] %vm438_vm4, %v2661_v19  ;;  %v2662_v24 = vadd.f32 %v2636_v31, %v2610_v11  ;;  %v2584_v44 = vmul.f32 %v2513_v27, %v2428_v2  ;;  %v2438_v31 = vld [vmem:[#allocation4 + $0xc0] sm:$0xff] }
 0x3b7   : > { %v2647_v27 = vld [vmem:[%s4409_s12 + $0xc0] sm:$0xff] }
 0x3b8   : > { %2688 = vst.msk [vmem:[%s4418_s15 + $0x68] sm:$0xff] %vm438_vm4, %v2662_v24  ;;  %v2611_v38 = vmul.f32 %v4411_v16, %v2584_v44  ;;  %v2439_v44 = vld [vmem:[#allocation4 + $0xc8] sm:$0xff] }
 0x3b9   : > { %v2518_v61 = vpop.permute.xlu0 %2517 }
 0x3ba   : > { %v2663_v17 = vadd.f32 %v2637_v53, %v2611_v38  ;;  %v2585_v41 = vmul.f32 %v2518_v61, %v2429_v35  ;;  %v2648_v61 = vld [vmem:[%s4409_s12 + $0xc8] sm:$0xff] }
 0x3bc   : > { %2689 = vst.msk [vmem:[%s4418_s15 + $0x70] sm:$0xff] %vm438_vm4, %v2663_v17  ;;  %v2612_v15 = vmul.f32 %v4411_v16, %v2585_v41 }
 0x3bd   : > { %v2523_v28 = vpop.permute.xlu1 %2522 }
 0x3be   : > { %v2664_v59 = vadd.f32 %v2638_v14, %v2612_v15  ;;  %v2586_v56 = vmul.f32 %v2523_v28, %v2430_v42 }
 0x3c0   : > { %2690 = vst.msk [vmem:[%s4418_s15 + $0x78] sm:$0xff] %vm438_vm4, %v2664_v59  ;;  %v2613_v48 = vmul.f32 %v4411_v16, %v2586_v56 }
 0x3c1   : > { %v2528_v33 = vpop.permute.xlu0 %2527 }
 0x3c2   : > { %v2665_v13 = vadd.f32 %v2639_v55, %v2613_v48  ;;  %v2587_v32 = vmul.f32 %v2528_v33, %v2431_v6 }
 0x3c4   : > { %2691 = vst.msk [vmem:[%s4418_s15 + $0x80] sm:$0xff] %vm438_vm4, %v2665_v13  ;;  %v2614_v10 = vmul.f32 %v4411_v16, %v2587_v32 }
 0x3c5   : > { %v2533_v23 = vpop.permute.xlu1 %2532 }
 0x3c6   : > { %v2666_v37 = vadd.f32 %v2640_v30, %v2614_v10  ;;  %v2588_v60 = vmul.f32 %v2533_v23, %v2432_v57 }
 0x3c8   : > { %2692 = vst.msk [vmem:[%s4418_s15 + $0x88] sm:$0xff] %vm438_vm4, %v2666_v37  ;;  %v2615_v22 = vmul.f32 %v4411_v16, %v2588_v60 }
 0x3c9   : > { %v2538_v43 = vpop.permute.xlu0 %2537 }
 0x3ca   : > { %v2667_v45 = vadd.f32 %v2641_v0, %v2615_v22  ;;  %v2589_v58 = vmul.f32 %v2538_v43, %v2433_v4 }
 0x3cc   : > { %2693 = vst.msk [vmem:[%s4418_s15 + $0x90] sm:$0xff] %vm438_vm4, %v2667_v45  ;;  %v2616_v3 = vmul.f32 %v4411_v16, %v2589_v58 }
 0x3cd   : > { %v2543_v49 = vpop.permute.xlu1 %2542 }
 0x3ce   : > { %v2668_v54 = vadd.f32 %v2642_v21, %v2616_v3  ;;  %v2590_v25 = vmul.f32 %v2543_v49, %v2434_v40 }
 0x3d0   : > { %2694 = vst.msk [vmem:[%s4418_s15 + $0x98] sm:$0xff] %vm438_vm4, %v2668_v54  ;;  %v2617_v51 = vmul.f32 %v4411_v16, %v2590_v25 }
 0x3d1   : > { %v2548_v47 = vpop.permute.xlu0 %2547 }
 0x3d2   : > { %v2591_v34 = vmul.f32 %v2548_v47, %v2435_v8  ;;  %v2669_v62 = vadd.f32 %v2643_v26, %v2617_v51 }
 0x3d4   : > { %v2618_v46 = vmul.f32 %v4411_v16, %v2591_v34  ;;  %2695 = vst.msk [vmem:[%s4418_s15 + $0xa0] sm:$0xff] %vm438_vm4, %v2669_v62 }
 0x3d5   : > { %v2553_v52 = vpop.permute.xlu1 %2552 }
 0x3d6   : > { %v2670_v7 = vadd.f32 %v2644_v20, %v2618_v46  ;;  %v2592_v39 = vmul.f32 %v2553_v52, %v2436_v36 }
 0x3d8   : > { %2696 = vst.msk [vmem:[%s4418_s15 + $0xa8] sm:$0xff] %vm438_vm4, %v2670_v7  ;;  %v2619_v63 = vmul.f32 %v4411_v16, %v2592_v39 }
 0x3d9   : > { %v2558_v5 = vpop.permute.xlu0 %2557 }
 0x3da   : > { %v2671_v9 = vadd.f32 %v2645_v50, %v2619_v63  ;;  %v2593_v29 = vmul.f32 %v2558_v5, %v2437_v12 }
 0x3dc   : > { %2697 = vst.msk [vmem:[%s4418_s15 + $0xb0] sm:$0xff] %vm438_vm4, %v2671_v9  ;;  %v2620_v18 = vmul.f32 %v4411_v16, %v2593_v29 }
 0x3dd   : > { %v2563_v19 = vpop.permute.xlu1 %2562 }
 0x3de   : > { %v2672_v11 = vadd.f32 %v2646_v1, %v2620_v18  ;;  %v2594_v2 = vmul.f32 %v2563_v19, %v2438_v31 }
 0x3e0   : > { %2698 = vst.msk [vmem:[%s4418_s15 + $0xb8] sm:$0xff] %vm438_vm4, %v2672_v11  ;;  %v2621_v24 = vmul.f32 %v4411_v16, %v2594_v2 }
 0x3e1   : > { %v2568_v53 = vpop.permute.xlu0 %2567 }
 0x3e2   : > { %v2673_v38 = vadd.f32 %v2647_v27, %v2621_v24  ;;  %v2595_v35 = vmul.f32 %v2568_v53, %v2439_v44 }
 0x3e4   : > { %2699 = vst.msk [vmem:[%s4418_s15 + $0xc0] sm:$0xff] %vm438_vm4, %v2673_v38  ;;  %v2622_v17 = vmul.f32 %v4411_v16, %v2595_v35 }
 0x3e6   : > { %v2674_v41 = vadd.f32 %v2648_v61, %v2622_v17 }
 0x3e8   : > { %2700 = vst.msk [vmem:[%s4418_s15 + $0xc8] sm:$0xff] %vm438_vm4, %v2674_v41 }
 0x3e9 PF: > { %s16_s22 = sadd.s32 1, %s3222_s22   ;;  %s4673_s20 = smov %s3218_s21 }
 0x3ea   : > { %p13_p5 = scmp.ge.s32.totalorder %s16_s22, 4   ;;  %s4674_s21 = smov %s4676_s0 }
 0x3ec   :  { %15 = sbr.rel (!%p13_p5) target bundleno = 2 (0x2), region = 95 }

</bundles_post_ra>
